<compile_context>
chip_gen: v6e
topology: v6e:2x2x1
jax: 0.10.0
libtpu: 0.0.40
codegen_flags: <defaults>
</compile_context>

<pallas_src>
import functools

import jax
import jax.numpy as jnp
from jax.experimental import pallas as pl
from jax.experimental.pallas import tpu as pltpu


def _round_up(x, m):
    return (x + m - 1) // m * m


# -----------------------------------------------------------------------------
# Fused Pallas kernel: conv1d('same') + bias + ReLU + masked attention pooling
# -----------------------------------------------------------------------------
def _cnn_attention_kernel(x_ref, amask_ref, cw_ref, cb_ref, w1_ref, b1_ref,
                          w2_ref, o_ref, *, window, L):
    # x_ref     : (T, Lext, Dp)       bf16  pad-extended word embeddings (Lext >= L+window-1)
    # amask_ref : (T, L)              f32   additive mask (0 valid, -1e9 padding)
    # cw_ref    : (window*Dp, Kp)     bf16  conv weight, tap-major rows, zero-padded
    # cb_ref    : (1, Kp)             f32   conv bias (zero in padded channels)
    # w1_ref    : (Kp, Ap)            bf16  attention affine1 weight
    # b1_ref    : (1, Ap)             f32   attention affine1 bias
    # w2_ref    : (1, Ap)             f32   attention affine2 weight
    # o_ref     : (T, Kp)             f32   attention-pooled news representation
    T = x_ref.shape[0]
    Dp = x_ref.shape[2]
    Kp = cw_ref.shape[1]
    Ap = w1_ref.shape[1]

    # ---- Conv1d as ONE deep im2col matmul ------------------------------------
    # Output position l uses input positions l..l+window-1 of the pad-extended
    # block, so tap j is the static slice [:, j:j+L, :]; concatenating taps
    # along the (lane-dense, 128-multiple) feature axis matches the tap-major
    # [window*Dp, Kp] weight layout.
    xv = x_ref[...]                                            # bf16
    if window == 1:
        lhs = xv[:, 0:L, :]
    else:
        lhs = jnp.concatenate([xv[:, j:j + L, :] for j in range(window)],
                              axis=-1)                         # (T, L, window*Dp)
    lhs = lhs.reshape(T * L, window * Dp)
    conv = jnp.dot(lhs, cw_ref[...],
                   preferred_element_type=jnp.float32)         # (T*L, Kp) f32
    c = jnp.maximum(conv + cb_ref[...], 0.0)                   # ReLU

    # ---- Additive attention over title length (masked softmax) ---------------
    att = jnp.tanh(
        jnp.dot(c.astype(jnp.bfloat16), w1_ref[...],
                preferred_element_type=jnp.float32) + b1_ref[...])   # (T*L, Ap)
    s = jnp.sum(att.reshape(T, L, Ap) * w2_ref[...][None, :, :], axis=-1)  # (T, L)
    s = s + amask_ref[...]                                     # additive mask
    s = s - jnp.max(s, axis=-1, keepdims=True)
    e = jnp.exp(s)
    alpha = e * pl.reciprocal(jnp.sum(e, axis=-1, keepdims=True), approx=True)
    pooled = jnp.sum(alpha[:, :, None] * c.reshape(T, L, Kp), axis=1)   # (T, Kp)
    o_ref[...] = pooled.astype(o_ref.dtype)


def conv_attention_pool(x_emb, mask, conv_w, conv_b, att_w1, att_b1, att_w2,
                        *, block_items=64):
    """x_emb: [BN, L, D]; mask: [BN, L]; conv_w: [window, D, K]; conv_b: [K];
    att_w1: [K, A]; att_b1: [A]; att_w2: [A]  ->  [BN, K] f32."""
    BN, L, D = x_emb.shape
    window, _, K = conv_w.shape
    A = att_w1.shape[1]
    assert window % 2 == 1, "padding=(w-1)//2 is only 'same' for odd window"
    pad = (window - 1) // 2

    # Lane-dense padding of channel / contraction dims; padded channels get zero
    # weight AND zero bias so they contribute exactly 0 and are sliced off
    # before any downstream use.
    Kp = _round_up(K, 128)
    Ap = _round_up(A, 128)
    Dp = _round_up(D, 128)
    L8 = _round_up(L, 8)
    Lext = _round_up(L8 + window - 1, 8)   # pad-extended length for im2col slices

    cw = jnp.pad(conv_w, ((0, 0), (0, Dp - D), (0, Kp - K)))
    cw = cw.reshape(window * Dp, Kp).astype(jnp.bfloat16)      # tap-major rows
    cb = jnp.pad(conv_b, (0, Kp - K)).reshape(1, Kp).astype(jnp.float32)
    w1 = jnp.pad(att_w1, ((0, Kp - K), (0, Ap - A))).astype(jnp.bfloat16)
    b1 = jnp.pad(att_b1, (0, Ap - A)).reshape(1, Ap).astype(jnp.float32)
    w2 = jnp.pad(att_w2, (0, Ap - A)).reshape(1, Ap).astype(jnp.float32)

    # Item blocking: block_items=64 keeps peak in-kernel temporaries well inside
    # v7x's 64 MiB VMEM at production sizes (raise for v6e's 128 MiB if desired).
    T = min(block_items, _round_up(BN, 8))
    if T > 8 and _round_up(BN, T) // T < 2:
        # v7x has 2 TensorCores: make sure a "parallel" grid has >= 2 steps.
        T = max(8, _round_up(T // 2, 8))
    BNp = _round_up(BN, T)

    # Activations: ONE fused pad (conv 'same' left pad + L extension + item pad)
    # on bf16 data (no-op cast if the embedding table is already bf16).
    x = jnp.pad(x_emb.astype(jnp.bfloat16),
                ((0, BNp - BN), (pad, Lext - pad - L), (0, Dp - D)))
    # Pre-baked additive mask: 0 where valid, -1e9 on token / item padding.
    amask = jnp.pad((mask.astype(jnp.float32) - 1.0) * 1e9,
                    ((0, BNp - BN), (0, L8 - L)), constant_values=-1e9)

    out = pl.pallas_call(
        functools.partial(_cnn_attention_kernel, window=window, L=L8),
        out_shape=jax.ShapeDtypeStruct((BNp, Kp), jnp.float32),
        grid_spec=pltpu.PrefetchScalarGridSpec(
            num_scalar_prefetch=0,
            grid=(BNp // T,),
            in_specs=[
                pl.BlockSpec((T, Lext, Dp), lambda i: (i, 0, 0)),
                pl.BlockSpec((T, L8), lambda i: (i, 0)),
                pl.BlockSpec((window * Dp, Kp), lambda i: (0, 0)),
                pl.BlockSpec((1, Kp), lambda i: (0, 0)),
                pl.BlockSpec((Kp, Ap), lambda i: (0, 0)),
                pl.BlockSpec((1, Ap), lambda i: (0, 0)),
                pl.BlockSpec((1, Ap), lambda i: (0, 0)),
            ],
            out_specs=pl.BlockSpec((T, Kp), lambda i: (i, 0)),
        ),
        compiler_params=pltpu.CompilerParams(
            dimension_semantics=("parallel",),     # shard items over TCs (v7x)
            vmem_limit_bytes=48 * 1024 * 1024),
    )(x, amask, cw, cb, w1, b1, w2)
    return out[:BN, :K]


# -----------------------------------------------------------------------------
# CNN module parameters (deterministic in-script initialization)
# -----------------------------------------------------------------------------
class CNNParams:
    def __init__(self, key, *, vocab, word_dim, kernel_num, window,
                 attention_dim, cat_num, cat_dim, subcat_num, subcat_dim):
        ks = jax.random.split(key, 7)
        # TODO(synk): the PyTorch module copies pretrained word embeddings from a
        # pickle file; here they are randomly initialized in-script.  Stored in
        # bf16 so the XLA gather emits bf16 activations directly.
        self.word_embedding = (jax.random.normal(
            ks[0], (vocab, word_dim), jnp.float32) * 0.1).astype(jnp.bfloat16)
        # initialize(): uniform_(-0.1, 0.1), subCategory row 0 zeroed
        self.category_embedding = jax.random.uniform(
            ks[1], (cat_num, cat_dim), jnp.float32, -0.1, 0.1)
        sub = jax.random.uniform(ks[2], (subcat_num, subcat_dim),
                                 jnp.float32, -0.1, 0.1)
        self.subCategory_embedding = sub.at[0].set(0.0)
        # Conv1d (cnn_method='naive'): weight stored tap-major [window, D, K]
        # (PyTorch layout [K, D, window] maps via transpose(2, 1, 0)).
        bound = 1.0 / (word_dim * window) ** 0.5
        self.conv_w = jax.random.uniform(ks[3], (window, word_dim, kernel_num),
                                         jnp.float32, -bound, bound)
        self.conv_b = jax.random.uniform(ks[4], (kernel_num,), jnp.float32,
                                         -bound, bound)
        # Attention: affine1 = Linear(K, A) (xavier_uniform, tanh gain, zero
        # bias), affine2 = Linear(A, 1, bias=False) (xavier_uniform)
        gain = 5.0 / 3.0
        lim1 = gain * (6.0 / (kernel_num + attention_dim)) ** 0.5
        self.att_w1 = jax.random.uniform(ks[5], (kernel_num, attention_dim),
                                         jnp.float32, -lim1, lim1)
        self.att_b1 = jnp.zeros((attention_dim,), jnp.float32)
        lim2 = (6.0 / (attention_dim + 1)) ** 0.5
        self.att_w2 = jax.random.uniform(ks[6], (attention_dim,), jnp.float32,
                                         -lim2, lim2)
        self.kernel_num = kernel_num


def cnn_forward(params, title_text, title_mask, title_entity,
                content_text, content_mask, content_entity,
                category, subCategory, user_embedding):
    B, N, L = title_text.shape
    K = params.kernel_num

    # word embedding lookup (dropout identity in eval mode); bf16 table so the
    # gather result is already in kernel dtype.
    # TODO(synk): fuse this gather into the kernel (scalar-prefetched token ids
    # + DMA gather of embedding rows) to avoid the HBM round trip of [B*N,L,D].
    w = jnp.take(params.word_embedding, title_text.reshape(B * N, L), axis=0)
    mask = title_mask.reshape(B * N, L)

    # fused conv + ReLU + masked attention pooling (Pallas)
    news_rep = conv_attention_pool(w, mask, params.conv_w, params.conv_b,
                                   params.att_w1, params.att_b1, params.att_w2)
    news_rep = news_rep.reshape(B, N, K)

    # feature_fusion (glue; dropout identity in eval mode)
    cat_rep = jnp.take(params.category_embedding, category, axis=0)
    subcat_rep = jnp.take(params.subCategory_embedding, subCategory, axis=0)
    return jnp.concatenate([news_rep, cat_rep, subcat_rep], axis=2)


# -----------------------------------------------------------------------------
# Pure-JAX reference of the fused hot path (same bf16 input rounding)
# -----------------------------------------------------------------------------
def _ref_conv_attention_pool(x, mask, conv_w, conv_b, att_w1, att_b1, att_w2):
    window = conv_w.shape[0]
    L = x.shape[1]
    pad = (window - 1) // 2
    xb = x.astype(jnp.bfloat16).astype(jnp.float32)
    wb = conv_w.astype(jnp.bfloat16).astype(jnp.float32)
    xp = jnp.pad(xb, ((0, 0), (pad, pad), (0, 0)))
    conv = sum(jnp.einsum('bld,dk->blk', xp[:, j:j + L, :], wb[j])
               for j in range(window)) + conv_b[None, None, :]
    c = jnp.maximum(conv, 0.0)
    cb16 = c.astype(jnp.bfloat16).astype(jnp.float32)
    w1b16 = att_w1.astype(jnp.bfloat16).astype(jnp.float32)
    att = jnp.tanh(jnp.einsum('blk,ka->bla', cb16, w1b16)
                   + att_b1[None, None, :])
    s = jnp.sum(att * att_w2[None, None, :], axis=-1)
    s = jnp.where(mask == 0.0, -1e9, s)
    alpha = jax.nn.softmax(s, axis=-1)
    return jnp.sum(alpha[:, :, None] * c, axis=1)


if __name__ == "__main__":
    key = jax.random.PRNGKey(0)

    # small config
    batch, news_num = 2, 3
    vocab = 50
    word_dim = 32          # word_embedding_dim
    kernel_num = 64        # cnn_kernel_num
    window = 3             # cnn_window_size
    attention_dim = 64
    max_title_len = 16     # max_title_length
    max_content_len = 24
    cat_num, cat_dim = 8, 8
    subcat_num, subcat_dim = 10, 8

    pkey, dkey = jax.random.split(key)
    params = CNNParams(pkey, vocab=vocab, word_dim=word_dim,
                       kernel_num=kernel_num, window=window,
                       attention_dim=attention_dim,
                       cat_num=cat_num, cat_dim=cat_dim,
                       subcat_num=subcat_num, subcat_dim=subcat_dim)

    ks = jax.random.split(dkey, 5)
    title_text = jax.random.randint(ks[0], (batch, news_num, max_title_len),
                                    0, vocab)
    lengths = jax.random.randint(ks[1], (batch, news_num, 1), 4,
                                 max_title_len + 1)
    title_mask = (jnp.arange(max_title_len)[None, None, :]
                  < lengths).astype(jnp.float32)
    title_entity = jnp.zeros((batch, news_num, max_title_len), jnp.int32)
    content_text = jax.random.randint(ks[2], (batch, news_num, max_content_len),
                                      0, vocab)
    content_mask = jnp.ones((batch, news_num, max_content_len), jnp.float32)
    content_entity = jnp.zeros((batch, news_num, max_content_len), jnp.int32)
    category = jax.random.randint(ks[3], (batch, news_num), 0, cat_num)
    subCategory = jax.random.randint(ks[4], (batch, news_num), 0, subcat_num)
    user_embedding = jnp.zeros((batch, 16), jnp.float32)   # accepted, unused

    out = cnn_forward(params, title_text, title_mask, title_entity,
                      content_text, content_mask, content_entity,
                      category, subCategory, user_embedding)
    out = jax.block_until_ready(out)
    expected_dim = kernel_num + cat_dim + subcat_dim
    assert out.shape == (batch, news_num, expected_dim), out.shape

    # correctness check of the fused Pallas hot path against a pure-JAX ref
    w_flat = jnp.take(params.word_embedding,
                      title_text.reshape(batch * news_num, max_title_len),
                      axis=0)
    m_flat = title_mask.reshape(batch * news_num, max_title_len)
    ref = _ref_conv_attention_pool(w_flat, m_flat, params.conv_w, params.conv_b,
                                   params.att_w1, params.att_b1, params.att_w2)
    got = conv_attention_pool(w_flat, m_flat, params.conv_w, params.conv_b,
                              params.att_w1, params.att_b1, params.att_w2)
    got = jax.block_until_ready(got)
    assert got.shape == ref.shape, (got.shape, ref.shape)
    assert jnp.allclose(ref, got, atol=3e-3, rtol=3e-3), \
        float(jnp.max(jnp.abs(ref - got)))

    print("KERNEL_OK")
</pallas_src>

<mosaic_0001>
module attributes {stable_mosaic.version = 11 : i64} {
  func.func @_cnn_attention_kernel(%arg0: i32, %arg1: memref<8x24x128xbf16, #tpu.memory_space<vmem>>, %arg2: memref<8x16xf32, #tpu.memory_space<vmem>>, %arg3: memref<384x128xbf16, #tpu.memory_space<vmem>>, %arg4: memref<1x128xf32, #tpu.memory_space<vmem>>, %arg5: memref<128x128xbf16, #tpu.memory_space<vmem>>, %arg6: memref<1x128xf32, #tpu.memory_space<vmem>>, %arg7: memref<1x128xf32, #tpu.memory_space<vmem>>, %arg8: memref<8x128xf32, #tpu.memory_space<vmem>>) attributes {dimension_semantics = [#tpu.dimension_semantics<parallel>], iteration_bounds = array<i64: 1>, scalar_prefetch = 0 : i64, scratch_operands = 0 : i64, tpu.core_type = #tpu.core_type<tc>, window_params = [{transform_indices = @transform_0, window_bounds = array<i64: 8, 24, 128>}, {transform_indices = @transform_1, window_bounds = array<i64: 8, 16>}, {pipeline_mode = #tpu.pipeline_mode<synchronous>, transform_indices = @transform_2, window_bounds = array<i64: 384, 128>}, {pipeline_mode = #tpu.pipeline_mode<synchronous>, transform_indices = @transform_3, window_bounds = array<i64: 1, 128>}, {pipeline_mode = #tpu.pipeline_mode<synchronous>, transform_indices = @transform_4, window_bounds = array<i64: 128, 128>}, {pipeline_mode = #tpu.pipeline_mode<synchronous>, transform_indices = @transform_5, window_bounds = array<i64: 1, 128>}, {pipeline_mode = #tpu.pipeline_mode<synchronous>, transform_indices = @transform_6, window_bounds = array<i64: 1, 128>}, {transform_indices = @transform_7, window_bounds = array<i64: 8, 128>}]} {
    %c0 = arith.constant 0 : index
    %c0_0 = arith.constant 0 : index
    %c0_1 = arith.constant 0 : index
    %0 = vector.load %arg1[%c0, %c0_0, %c0_1] : memref<8x24x128xbf16, #tpu.memory_space<vmem>>, vector<8x24x128xbf16>
    %1 = vector.extract_strided_slice %0 {offsets = [0, 0, 0], sizes = [8, 16, 128], strides = [1, 1, 1]} : vector<8x24x128xbf16> to vector<8x16x128xbf16>
    %2 = vector.extract_strided_slice %0 {offsets = [0, 1, 0], sizes = [8, 16, 128], strides = [1, 1, 1]} : vector<8x24x128xbf16> to vector<8x16x128xbf16>
    %3 = vector.extract_strided_slice %0 {offsets = [0, 2, 0], sizes = [8, 16, 128], strides = [1, 1, 1]} : vector<8x24x128xbf16> to vector<8x16x128xbf16>
    %4 = tpu.concatenate %1, %2, %3 in 2 : vector<8x16x128xbf16>, vector<8x16x128xbf16>, vector<8x16x128xbf16> -> vector<8x16x384xbf16>
    %5 = vector.shape_cast %4 : vector<8x16x384xbf16> to vector<128x384xbf16>
    %c0_2 = arith.constant 0 : index
    %c0_3 = arith.constant 0 : index
    %6 = vector.load %arg3[%c0_2, %c0_3] : memref<384x128xbf16, #tpu.memory_space<vmem>>, vector<384x128xbf16>
    %cst = arith.constant dense<0.000000e+00> : vector<128x128xf32>
    %7 = tpu.matmul %5, %6, %cst {dimension_numbers = #tpu.dot_dimension_numbers<[1], [0], [0], [1], [0, 0, 1, 1], [], []>} : vector<128x384xbf16>, vector<384x128xbf16>, vector<128x128xf32> -> vector<128x128xf32>
    %c0_4 = arith.constant 0 : index
    %c0_5 = arith.constant 0 : index
    %8 = vector.load %arg4[%c0_4, %c0_5] : memref<1x128xf32, #tpu.memory_space<vmem>>, vector<1x128xf32>
    %9 = vector.broadcast %8 : vector<1x128xf32> to vector<128x128xf32>
    %10 = arith.addf %7, %9 : vector<128x128xf32>
    %cst_6 = arith.constant 0.000000e+00 : f32
    %11 = vector.broadcast %cst_6 : f32 to vector<128x128xf32>
    %12 = arith.maximumf %10, %11 : vector<128x128xf32>
    %13 = arith.truncf %12 : vector<128x128xf32> to vector<128x128xbf16>
    %c0_7 = arith.constant 0 : index
    %c0_8 = arith.constant 0 : index
    %14 = vector.load %arg5[%c0_7, %c0_8] : memref<128x128xbf16, #tpu.memory_space<vmem>>, vector<128x128xbf16>
    %cst_9 = arith.constant dense<0.000000e+00> : vector<128x128xf32>
    %15 = tpu.matmul %13, %14, %cst_9 {dimension_numbers = #tpu.dot_dimension_numbers<[1], [0], [0], [1], [0, 0, 1, 1], [], []>} : vector<128x128xbf16>, vector<128x128xbf16>, vector<128x128xf32> -> vector<128x128xf32>
    %c0_10 = arith.constant 0 : index
    %c0_11 = arith.constant 0 : index
    %16 = vector.load %arg6[%c0_10, %c0_11] : memref<1x128xf32, #tpu.memory_space<vmem>>, vector<1x128xf32>
    %17 = vector.broadcast %16 : vector<1x128xf32> to vector<128x128xf32>
    %18 = arith.addf %15, %17 : vector<128x128xf32>
    %19 = math.tanh %18 : vector<128x128xf32>
    %20 = vector.shape_cast %19 : vector<128x128xf32> to vector<8x16x128xf32>
    %c0_12 = arith.constant 0 : index
    %c0_13 = arith.constant 0 : index
    %21 = vector.load %arg7[%c0_12, %c0_13] : memref<1x128xf32, #tpu.memory_space<vmem>>, vector<1x128xf32>
    %22 = vector.shape_cast %21 : vector<1x128xf32> to vector<1x1x128xf32>
    %23 = vector.broadcast %22 : vector<1x1x128xf32> to vector<8x16x128xf32>
    %24 = arith.mulf %20, %23 : vector<8x16x128xf32>
    %cst_14 = arith.constant dense<0.000000e+00> : vector<8x16xf32>
    %25 = vector.multi_reduction <add>, %24, %cst_14 [2] : vector<8x16x128xf32> to vector<8x16xf32>
    %c0_15 = arith.constant 0 : index
    %c0_16 = arith.constant 0 : index
    %26 = vector.load %arg2[%c0_15, %c0_16] : memref<8x16xf32, #tpu.memory_space<vmem>>, vector<8x16xf32>
    %27 = arith.addf %25, %26 : vector<8x16xf32>
    %cst_17 = arith.constant dense<0xFF800000> : vector<8xf32>
    %28 = vector.multi_reduction <maximumf>, %27, %cst_17 [1] : vector<8x16xf32> to vector<8xf32>
    %29 = vector.shape_cast %28 : vector<8xf32> to vector<8x1xf32>
    %30 = vector.broadcast %29 : vector<8x1xf32> to vector<8x16xf32>
    %31 = arith.subf %27, %30 : vector<8x16xf32>
    %32 = math.exp %31 : vector<8x16xf32>
    %cst_18 = arith.constant dense<0.000000e+00> : vector<8xf32>
    %33 = vector.multi_reduction <add>, %32, %cst_18 [1] : vector<8x16xf32> to vector<8xf32>
    %34 = vector.shape_cast %33 : vector<8xf32> to vector<8x1xf32>
    %35 = tpu.reciprocal %34 {approx = true} : vector<8x1xf32> -> vector<8x1xf32>
    %36 = vector.broadcast %35 : vector<8x1xf32> to vector<8x16xf32>
    %37 = arith.mulf %32, %36 : vector<8x16xf32>
    %38 = vector.shape_cast %37 : vector<8x16xf32> to vector<8x16x1xf32>
    %39 = vector.shape_cast %12 : vector<128x128xf32> to vector<8x16x128xf32>
    %40 = vector.broadcast %38 : vector<8x16x1xf32> to vector<8x16x128xf32>
    %41 = arith.mulf %40, %39 : vector<8x16x128xf32>
    %cst_19 = arith.constant dense<0.000000e+00> : vector<8x128xf32>
    %42 = vector.multi_reduction <add>, %41, %cst_19 [1] : vector<8x16x128xf32> to vector<8x128xf32>
    %c0_20 = arith.constant 0 : index
    %c0_21 = arith.constant 0 : index
    %43 = vector.load %arg8[%c0_20, %c0_21] : memref<8x128xf32, #tpu.memory_space<vmem>>, vector<8x128xf32>
    tpu.vector_store %arg8[%c0_20, %c0_21], %42 {strides = array<i32>} : memref<8x128xf32, #tpu.memory_space<vmem>>, vector<8x128xf32>,
    return
  }
  func.func @transform_0(%arg0: i32) -> (i32, i32, i32) {
    %c0_i32 = arith.constant 0 : i32
    %c0_i32_0 = arith.constant 0 : i32
    %c0_i32_1 = arith.constant 0 : i32
    return %arg0, %c0_i32, %c0_i32_0 : i32, i32, i32
  }
  func.func @transform_1(%arg0: i32) -> (i32, i32) {
    %c0_i32 = arith.constant 0 : i32
    %c0_i32_0 = arith.constant 0 : i32
    return %arg0, %c0_i32 : i32, i32
  }
  func.func @transform_2(%arg0: i32) -> (i32, i32) {
    %c0_i32 = arith.constant 0 : i32
    %c0_i32_0 = arith.constant 0 : i32
    %c0_i32_1 = arith.constant 0 : i32
    return %c0_i32, %c0_i32_0 : i32, i32
  }
  func.func @transform_3(%arg0: i32) -> (i32, i32) {
    %c0_i32 = arith.constant 0 : i32
    %c0_i32_0 = arith.constant 0 : i32
    %c0_i32_1 = arith.constant 0 : i32
    return %c0_i32, %c0_i32_0 : i32, i32
  }
  func.func @transform_4(%arg0: i32) -> (i32, i32) {
    %c0_i32 = arith.constant 0 : i32
    %c0_i32_0 = arith.constant 0 : i32
    %c0_i32_1 = arith.constant 0 : i32
    return %c0_i32, %c0_i32_0 : i32, i32
  }
  func.func @transform_5(%arg0: i32) -> (i32, i32) {
    %c0_i32 = arith.constant 0 : i32
    %c0_i32_0 = arith.constant 0 : i32
    %c0_i32_1 = arith.constant 0 : i32
    return %c0_i32, %c0_i32_0 : i32, i32
  }
  func.func @transform_6(%arg0: i32) -> (i32, i32) {
    %c0_i32 = arith.constant 0 : i32
    %c0_i32_0 = arith.constant 0 : i32
    %c0_i32_1 = arith.constant 0 : i32
    return %c0_i32, %c0_i32_0 : i32, i32
  }
  func.func @transform_7(%arg0: i32) -> (i32, i32) {
    %c0_i32 = arith.constant 0 : i32
    %c0_i32_0 = arith.constant 0 : i32
    return %arg0, %c0_i32 : i32, i32
  }
}

</mosaic_0001>

<bundles_post_ra>
// kernel: tpu_custom_call.1
= control target key start
LH: loop header
LB: loop body
LE: loop exit
PB: predicated region body
PF: predicated region fallthrough
CT: control target
= control target key end

     0   :  { %12 = vsyncpa [#allocation3], 0  ;;  %s2718_s0 = inlined_call_operand.hbm [shape: bf16[8,24,128], index: 0, kind: input, shape index: {}]   ;;  %s2719_s1 = inlined_call_operand.hbm [shape: f32[8,16], index: 1, kind: input, shape index: {}]   ;;  %s2720_s2 = inlined_call_operand.hbm [shape: bf16[384,128], index: 2, kind: input, shape index: {}]   ;;  %s2721_s3 = inlined_call_operand.vmem [shape: f32[1,128], index: 3, kind: input, shape index: {}]   ;;  %s2722_s4 = inlined_call_operand.hbm [shape: bf16[128,128], index: 4, kind: input, shape index: {}]   ;;  %s2723_s5 = inlined_call_operand.vmem [shape: f32[1,128], index: 5, kind: input, shape index: {}]   ;;  %s2724_s6 = inlined_call_operand.vmem [shape: f32[1,128], index: 6, kind: input, shape index: {}]   ;;  %s2725_s7 = inlined_call_operand.hbm [shape: f32[8,128], index: 7, kind: output, shape index: {}]  }
   0x1   :  { %13 = vsyncpa [#allocation6], 0 }
   0x2   :  { %14 = vsyncpa [#allocation9], 0 }
   0x3   :  { %15 = vsyncpa [#allocation4], 0  ;;  %s2175_s24 = smov [#allocation5]   ;;  %s2176_s26 = smov [#allocation2]  }
   0x4   :  { %s34_s25 = sshll.u32 %s2175_s24, 4  ;;  %s21_s27 = sshll.u32 %s2176_s26, 4  ;;  %s35_s25 = int_to_ptr.vmem [resolvable:$true] %s34_s25  ;;  %s22_s27 = int_to_ptr.vmem [resolvable:$true] %s21_s27 }
   0x5   :  { %s2075_s28 = scalar_lea.vmem %s35_s25, 128  ;;  %p2080_p1 = scmp.lt.s32.totalorder %s35_s25, %s35_s25 }
   0x6   :  { %p2076_p0 = scmp.ne.s32.totalorder %s35_s25, %s2075_s28  ;;  %p2081_p2 = scmp.lt.s32.totalorder %s2075_s28, %s2075_s28 }
   0x8   :  { %p2082_p3 = por %p2081_p2, %p2080_p1 }
   0xa   :  { %p2083_p4 = pnand %p2082_p3, %p2076_p0 }
   0xc   :  { %2086 = shalt.err (!%p2083_p4)
}
   0xd   :  { %37 = dma.hbm_to_vmem [thread:$0]  %s2719_s1, 128, %s35_s25, [#allocation6]  }
   0xe   :  { %s2095_s8 = scalar_lea.vmem %s22_s27, 1536  ;;  %p2100_p6 = scmp.lt.s32.totalorder %s22_s27, %s22_s27 }
   0xf   :  { %p2096_p5 = scmp.ne.s32.totalorder %s22_s27, %s2095_s8  ;;  %p2101_p7 = scmp.lt.s32.totalorder %s2095_s8, %s2095_s8 }
  0x11   :  { %p2102_p8 = por %p2101_p7, %p2100_p6 }
  0x13   :  { %p2103_p9 = pnand %p2102_p8, %p2096_p5 }
  0x15   :  { %2106 = shalt.err (!%p2103_p9)
}
  0x16   :  { %s2177_s9 = smov 64   ;;  %s2178_s10 = smov 4  }
  0x17   :  { %27 = dma.hbm_to_vmem [thread:$0]  %s2718_s0, 1536, %s22_s27, [#allocation3], %s2177_s9, %s2177_s9, %s2178_s10  }
  0x18   :  { %s2179_s13 = smov [#allocation7]   ;;  %s2180_s15 = smov [#allocation8]  }
  0x19   :  { %s43_s14 = sshll.u32 %s2179_s13, 4  ;;  %s57_s16 = sshll.u32 %s2180_s15, 4  ;;  %s44_s14 = int_to_ptr.vmem [resolvable:$true] %s43_s14  ;;  %s58_s16 = int_to_ptr.vmem [resolvable:$true] %s57_s16 }
  0x1a   :  { %s2115_s1 = scalar_lea.vmem %s44_s14, 3072  ;;  %p2120_p11 = scmp.lt.s32.totalorder %s44_s14, %s44_s14 }
  0x1b   :  { %p2116_p10 = scmp.ne.s32.totalorder %s44_s14, %s2115_s1  ;;  %p2121_p12 = scmp.lt.s32.totalorder %s2115_s1, %s2115_s1 }
  0x1d   :  { %p2122_p13 = por %p2121_p12, %p2120_p11 }
  0x1f   :  { %p2123_p0 = pnand %p2122_p13, %p2116_p10 }
  0x21   :  { %2126 = shalt.err (!%p2123_p0)
}
  0x22   :  { %49 = dma.hbm_to_vmem [thread:$0]  %s2720_s2, 3072, %s44_s14, [#allocation6], %s2177_s9, %s2177_s9, %s2178_s10  }
  0x23   :  { %s2135_s19 = scalar_lea.vmem %s58_s16, 1024  ;;  %p2140_p2 = scmp.lt.s32.totalorder %s58_s16, %s58_s16 }
  0x24   :  { %p2136_p1 = scmp.ne.s32.totalorder %s58_s16, %s2135_s19  ;;  %p2141_p3 = scmp.lt.s32.totalorder %s2135_s19, %s2135_s19 }
  0x26   :  { %p2142_p4 = por %p2141_p3, %p2140_p2 }
  0x28   :  { %p2143_p5 = pnand %p2142_p4, %p2136_p1 }
  0x2a   :  { %2146 = shalt.err (!%p2143_p5)
}
  0x2b   :  { %63 = dma.hbm_to_vmem [thread:$0]  %s2722_s4, 1024, %s58_s16, [#allocation9], %s2177_s9, %s2177_s9, %s2178_s10  }
  0x2c   :  { %2167 = dma.done.wait [#allocation3], 1536  }
  0x2d   :  { %2168 = vsyncadd [#allocation3], 4294965760 }
  0x2e   :  { %2169 = dma.done.wait [#allocation6], 3200  }
  0x2f   :  { %2170 = vsyncadd [#allocation6], 4294964096 }
  0x30   :  { %2171 = dma.done.wait [#allocation9], 1024  }
  0x31   :  { %2172 = vsyncadd [#allocation9], 4294966272  ;;  %v1953_v0 = vld [vmem:[#allocation7 + $0x78] sm:$0xff]   ;;  %v1955_v2 = vld [vmem:[#allocation7 + $0x70] sm:$0xff]   ;;  %vm177_vm0 = vsmask.f32 7424 }
  0x32   :  { %v1954_v1 = vld [vmem:[#allocation7 + $0x38] sm:$0xff]   ;;  %1783 = vmatprep.subr.bf16.mxu0 %v1953_v0  ;;  %v1957_v4 = vld [vmem:[#allocation7 + $0x30] sm:$0xff]   ;;  %v1958_v5 = vld [vmem:[#allocation7 + $0x68] sm:$0xff]   ;;  %vm282_vm1 = vcmask 1046528   ;;  %vm1168_vm2 = vcmask 130112   ;;  %vm1233_vm3 = vcmask 1041409  }
  0x33   :  { %1784 = vmatpush3.bf16.msra.mxu0 %v1954_v1  ;;  %v1956_v3 = vld [vmem:[#allocation7 + $0xb8] sm:$0xff]   ;;  %v1959_v6 = vld [vmem:[#allocation7 + $0xb0] sm:$0xff]   ;;  %v1960_v7 = vld [vmem:[#allocation7 + $0x28] sm:$0xff]   ;;  %vm1235_vm4 = vcmask 1042434   ;;  %vm1237_vm5 = vcmask 1043459   ;;  %vm1239_vm6 = vcmask 1044484  }
  0x34   :  { %1785 = vmatprep.subr.bf16.mxu0 %v1955_v2  ;;  %1879 = vmatprep.subr.bf16.mxu1 %v1956_v3  ;;  %v1961_v8 = vld [vmem:[#allocation7 + $0x60] sm:$0xff]   ;;  %v1962_v9 = vld [vmem:[#allocation7 + $0xa8] sm:$0xff]   ;;  %v1964_v11 = vld [vmem:[#allocation7 + $0x58] sm:$0xff]   ;;  %vm1241_vm7 = vcmask 1045509   ;;  %vm1243_vm8 = vcmask 1046534   ;;  %vm1245_vm9 = vcmask 1047559  }
  0x35   :  { %1880 = vmatpush3.bf16.msra.mxu1 %v1956_v3  ;;  %v1963_v10 = vld [vmem:[#allocation7 + $0x20] sm:$0xff]   ;;  %v1966_v13 = vld [vmem:[#allocation7 + $0x18] sm:$0xff]   ;;  %v1967_v15 = vld [vmem:[#allocation7 + $0x50] sm:$0xff]   ;;  %vm1248_vm10 = vcmask 130048  }
  0x36   :  { %1881 = vmatprep.subr.bf16.mxu1 %v1959_v6  ;;  %v1965_v12 = vld [vmem:[#allocation7 + $0xa0] sm:$0xff]   ;;  %v1968_v14 = vld [vmem:[#allocation7 + $0x98] sm:$0xff]   ;;  %v1969_v16 = vld [vmem:[#allocation7 + $0x10] sm:$0xff]  }
  0x37   :  { %1786 = vmatpush3.bf16.msra.mxu0 %v1957_v4  ;;  %v1971_v17 = vld [vmem:[#allocation7 + $0x90] sm:$0xff]   ;;  %v1970_v18 = vld [vmem:[#allocation7 + $0x48] sm:$0xff]   ;;  %v1973_v20 = vld [vmem:[#allocation7 + $0x40] sm:$0xff]  }
  0x38   :  { %1787 = vmatprep.subr.bf16.mxu0 %v1958_v5  ;;  %v1972_v19 = vld [vmem:[#allocation7 + $0x8] sm:$0xff]   ;;  %v1976_v22 = vld [vmem:[#allocation2] sm:$0xff]   ;;  %v1977_v23 = vld [vmem:[#allocation2 + $0x8] ss:$0 sps:$4 sm:$0xff]  }
  0x39   :  { %1882 = vmatpush3.bf16.msra.mxu1 %v1959_v6  ;;  %v1974_v21 = vld [vmem:[#allocation7 + $0x88] sm:$0xff]   ;;  %v1975_v24 = vld [vmem:[#allocation7] sm:$0xff]   ;;  %v179_v26 = vshrl.u32 %v1976_v22, 16  ;;  %v181_v27 = vshll.u32 %v1976_v22, 16  ;;  %v186_v28 = vshll.u32 %v1977_v23, 16  ;;  %v283_v29 = vrot.slane %v1976_v22, 1 }
  0x3a   :  { %1883 = vmatprep.subr.bf16.mxu1 %v1962_v9  ;;  %v1978_v25 = vld [vmem:[#allocation7 + $0x80] sm:$0xff]   ;;  %v284_v30 = vrot.slane %v1977_v23, 1  ;;  %v1980_v32 = vld [vmem:[#allocation2 + $0x14] ss:$0 sps:$4 sm:$0xff]   ;;  %v2236_v39 = vld [vmem:[#allocation2 + $0x18] sm:$0xff]  }
  0x3b   :  { %1788 = vmatpush3.bf16.msra.mxu0 %v1960_v7  ;;  %v1979_v31 = vld [vmem:[#allocation2 + $0xc] sm:$0xff]   ;;  %v183_v33 = vrot.slane %v181_v27, 1  ;;  %v188_v34 = vrot.slane %v186_v28, 1  ;;  %v287_v37 = vrot.slane %v1980_v32, 1  ;;  %v198_v42 = vshll.u32 %v1980_v32, 16  ;;  %v2242_v51 = vld [vmem:[#allocation2 + $0x24] sm:$0xff]  }
  0x3c   :  { %1789 = vmatprep.subr.bf16.mxu0 %v1961_v8  ;;  %v285_v35 = vsel %vm282_vm1, %v283_v29, %v284_v30  ;;  %v286_v36 = vrot.slane %v1979_v31, 1  ;;  %v191_v38 = vshrl.u32 %v1979_v31, 16  ;;  %v193_v41 = vshll.u32 %v1979_v31, 16  ;;  %v1982_v43 = vld [vmem:[#allocation2 + $0x20] ss:$0 sps:$4 sm:$0xff]   ;;  %v2248_v62 = vld [vmem:[#allocation2 + $0x30] sm:$0xff]  }
  0x3d   :  { %1884 = vmatpush3.bf16.msra.mxu1 %v1962_v9  ;;  %v184_v40 = vor.u32 %v183_v33, %v179_v26  ;;  %1895 = vmatprep.mubr.bf16.mxu1 %v285_v35  ;;  %v203_v44 = vshrl.u32 %v2236_v39, 16  ;;  %v205_v45 = vshll.u32 %v2236_v39, 16  ;;  %v289_v46 = vrot.slane %v2236_v39, 1  ;;  %v1984_v56 = vld [vmem:[#allocation2 + $0x2c] ss:$0 sps:$4 sm:$0xff]   ;;  %v1987_v9 = vld [vmem:[#allocation2 + $0x3c] sm:$0xff]  }
  0x3e   :  { %1885 = vmatprep.subr.bf16.mxu1 %v1965_v12  ;;  %v195_v48 = vrot.slane %v193_v41, 1  ;;  %v200_v49 = vrot.slane %v198_v42, 1  ;;  %v210_v50 = vshll.u32 %v1982_v43, 16  ;;  %v290_v53 = vrot.slane %v1982_v43, 1  ;;  %v1986_v63 = vld [vmem:[#allocation2 + $0x38] ss:$0 sps:$4 sm:$0xff]  }
  0x3f   :  { %1790 = vmatpush3.bf16.msra.mxu0 %v1963_v10  ;;  %v189_v47 = vsel %vm177_vm0, %v184_v40, %v188_v34  ;;  %v207_v52 = vrot.slane %v205_v45, 1  ;;  %v288_v54 = vsel %vm282_vm1, %v286_v36, %v287_v37  ;;  %v217_v61 = vshll.u32 %v2242_v51, 16  ;;  %v1991_v27 = vld [vmem:[#allocation2 + $0x54] sm:$0xff]   ;;  %v1992_v28 = vld [vmem:[#allocation2 + $0x5c] ss:$0 sps:$4 sm:$0xff]  }
  0x40   :  { %1791 = vmatprep.subr.bf16.mxu0 %v1964_v11  ;;  %546 = vmatprep.mubr.bf16.mxu0 %v189_v47  ;;  %v196_v55 = vor.u32 %v195_v48, %v191_v38  ;;  %v291_v57 = vsel %vm282_vm1, %v289_v46, %v290_v53  ;;  %v212_v60 = vrot.slane %v210_v50, 1  ;;  %v292_v0 = vrot.slane %v2242_v51, 1  ;;  %v1988_v11 = vld [vmem:[#allocation2 + $0x44] ss:$0 sps:$4 sm:$0xff]  }
  0x41   :  { %1886 = vmatpush3.bf16.msra.mxu1 %v1965_v12  ;;  %v208_v59 = vor.u32 %v207_v52, %v203_v44  ;;  %v293_v1 = vrot.slane %v1984_v56, 1  ;;  %v215_v2 = vshrl.u32 %v2242_v51, 16  ;;  %v295_v3 = vrot.slane %v2248_v62, 1 }
  0x42   :  { %1887 = vmatprep.subr.bf16.mxu1 %v1968_v14  ;;  %v201_v58 = vsel %vm177_vm0, %v196_v55, %v200_v49  ;;  %v296_v4 = vrot.slane %v1986_v63, 1  ;;  %v219_v6 = vrot.slane %v217_v61, 1  ;;  %v222_v7 = vshll.u32 %v1984_v56, 16  ;;  %v1998_v61 = vld [vmem:[#allocation8 + $0x10] sm:$0xff]  }
  0x43   :  { %1792 = vmatpush3.bf16.msra.mxu0 %v1966_v13  ;;  %v213_v5 = vsel %vm177_vm0, %v208_v59, %v212_v60  ;;  %v229_v8 = vshll.u32 %v2248_v62, 16  ;;  %v294_v10 = vsel %vm282_vm1, %v292_v0, %v293_v1  ;;  %v1993_v13 = vld [vmem:[#allocation8 + $0x38] sm:$0xff]   ;;  %v299_v23 = vrot.slane %v1988_v11, 1  ;;  %v1996_v59 = vld [vmem:[#allocation8 + $0x20] sm:$0xff]  }
  0x44   :  { %1793 = vmatprep.subr.bf16.mxu0 %v1967_v15  ;;  %v297_v12 = vsel %vm282_vm1, %v295_v3, %v296_v4  ;;  %v224_v15 = vrot.slane %v222_v7, 1  ;;  %v241_v33 = vshll.u32 %v1987_v9, 16  ;;  %v304_v34 = vrot.slane %v1991_v27, 1  ;;  %v1997_v60 = vld [vmem:[#allocation8 + $0x18] sm:$0xff]  }
  0x45   :  { %1888 = vmatpush3.bf16.msra.mxu1 %v1968_v14  ;;  %v220_v14 = vor.u32 %v219_v6, %v215_v2  ;;  %v305_v35 = vrot.slane %v1992_v28, 1  ;;  %v239_v37 = vshrl.u32 %v1987_v9, 16  ;;  %v246_v40 = vshll.u32 %v1988_v11, 16  ;;  %v2272_v2 = vld [vmem:[#allocation5] sm:$0xff] }
  0x46   :  { %1889 = vmatprep.subr.bf16.mxu1 %v1971_v17  ;;  %v243_v38 = vrot.slane %v241_v33, 1  ;;  %v265_v50 = vshll.u32 %v1991_v27, 16  ;;  %v263_v52 = vshrl.u32 %v1991_v27, 16  ;;  %v973_v0 = vlaneseq }
  0x47   :  { %1794 = vmatpush3.bf16.msra.mxu0 %v1969_v16  ;;  %v227_v16 = vshrl.u32 %v2248_v62, 16  ;;  %v225_v26 = vsel %vm177_vm0, %v220_v14, %v224_v15  ;;  %v248_v42 = vrot.slane %v246_v40, 1 }
  0x48   :  { %1795 = vmatprep.subr.bf16.mxu0 %v1970_v18  ;;  %v1990_v18 = vld [vmem:[#allocation2 + $0x50] ss:$0 sps:$4 sm:$0xff]   ;;  %v244_v41 = vor.u32 %v243_v38, %v239_v37  ;;  %v267_v53 = vrot.slane %v265_v50, 1  ;;  %v2270_v1 = vshrl.u32 %v973_v0, 7 }
  0x49   :  { %1890 = vmatpush3.bf16.msra.mxu1 %v1971_v17  ;;  %v1989_v17 = vld [vmem:[#allocation2 + $0x48] sm:$0xff]   ;;  %v258_v47 = vshll.u32 %v1990_v18, 16 }
  0x4a   :  { %1891 = vmatprep.subr.bf16.mxu1 %v1974_v21  ;;  %v253_v43 = vshll.u32 %v1989_v17, 16  ;;  %v249_v44 = vsel %vm177_vm0, %v244_v41, %v248_v42  ;;  %v251_v45 = vshrl.u32 %v1989_v17, 16  ;;  %v268_v55 = vor.u32 %v267_v53, %v263_v52 }
  0x4b   :  { %1796 = vmatpush3.bf16.msra.mxu0 %v1972_v19  ;;  %v1994_v19 = vld [vmem:[#allocation8 + $0x30] sm:$0xff]   ;;  %v260_v49 = vrot.slane %v258_v47, 1  ;;  %v2275_v3 = vsub.s32 0, %v2270_v1  ;;  %v2278_v4 = vsub.s32 1, %v2270_v1  ;;  %v2283_v6 = vsub.s32 2, %v2270_v1 }
  0x4c   :  { %1797 = vmatprep.subr.bf16.mxu0 %v1973_v20  ;;  %v231_v20 = vrot.slane %v229_v8, 1  ;;  %v255_v46 = vrot.slane %v253_v43, 1  ;;  %v2295_v11 = vsub.s32 4, %v2270_v1  ;;  %v2305_v15 = vsub.s32 6, %v2270_v1 }
  0x4d   :  { %1892 = vmatpush3.bf16.msra.mxu1 %v1974_v21  ;;  %v234_v21 = vshll.u32 %v1986_v63, 16  ;;  %v2000_v63 = vld [vmem:[#allocation8] sm:$0xff]   ;;  %v987_v7 = vrot.slane %v2272_v2, %v2278_v4  ;;  %v998_v8 = vrot.slane %v2272_v2, %v2283_v6 }
  0x4e   :  { %1893 = vmatprep.subr.bf16.mxu1 %v1978_v25  ;;  %v256_v48 = vor.u32 %v255_v46, %v251_v45 }
  0x4f   :  { %1798 = vmatpush3.bf16.msra.mxu0 %v1975_v24  ;;  %v301_v24 = vrot.slane %v1989_v17, 1  ;;  %v236_v32 = vrot.slane %v234_v21, 1 }
  0x51   :  { %1894 = vmatpush3.bf16.msra.mxu1 %v1978_v25  ;;  %v302_v25 = vrot.slane %v1990_v18, 1 }
  0x52   :  { %547 = vmatmul.mubr.bf16.vlgmr.msra.gmra.mxu0 %v1976_v22  ;;  %1911 = vmatprep.subr.bf16.mxu1 %v1993_v13  ;;  %v298_v22 = vrot.slane %v1987_v9, 1 }
  0x53   :  { %554 = vmatprep.mubr.bf16.mxu0 %v201_v58  ;;  %v303_v30 = vsel %vm282_vm1, %v301_v24, %v302_v25  ;;  %v1995_v58 = vld [vmem:[#allocation8 + $0x28] sm:$0xff]  }
  0x54   :  { %1896 = vmatmul.mubr.bf16.vlgmr.msra.gmra.mxu1 %v288_v54  ;;  %v300_v29 = vsel %vm282_vm1, %v298_v22, %v299_v23  ;;  %v270_v54 = vshll.u32 %v1992_v28, 16 }
  0x55   :  { %1899 = vmatprep.mubr.bf16.mxu1 %v291_v57  ;;  %1912 = vmatpush3.bf16.msra.mxu1 %v1993_v13  ;;  %v2300_v13 = vsub.s32 5, %v2270_v1 }
  0x56   :  { %1913 = vmatprep.subr.bf16.mxu1 %v1994_v19  ;;  %v272_v56 = vrot.slane %v270_v54, 1 }
  0x57   :  { %v1031_v14 = vrot.slane %v2272_v2, %v2300_v13 }
  0x58   :  { %v273_v57 = vsel %vm177_vm0, %v268_v55, %v272_v56 }
  0x59   :  { %1914 = vmatpush3.bf16.msra.mxu1 %v1994_v19  ;;  %v2312_v19 = vld [vmem:[%s2721_s3] ss:$0 sm:$0xff] }
  0x5a   :  { %555 = vmatmul.mubr.bf16.gmra.mxu0 %v1979_v31  ;;  %v232_v31 = vor.u32 %v231_v20, %v227_v16  ;;  %1915 = vmatprep.subr.bf16.mxu1 %v1995_v58  ;;  %v1042_v16 = vrot.slane %v2272_v2, %v2305_v15 }
  0x5b   :  { %562 = vmatprep.mubr.bf16.mxu0 %v213_v5  ;;  %v976_v5 = vrot.slane %v2272_v2, %v2275_v3 }
  0x5c   :  { %1900 = vmatmul.mubr.bf16.gmra.mxu1 %v294_v10  ;;  %v237_v36 = vsel %vm177_vm0, %v232_v31, %v236_v32 }
  0x5d   :  { %1903 = vmatprep.mubr.bf16.mxu1 %v297_v12  ;;  %1916 = vmatpush3.bf16.msra.mxu1 %v1995_v58  ;;  %v1020_v12 = vrot.slane %v2272_v2, %v2295_v11 }
  0x5e   :  { %1917 = vmatprep.subr.bf16.mxu1 %v1996_v59  ;;  %982 = vbcast.lane.b32.xlu1 %v976_v5, 264 }
  0x5f   :  { %978 = vbcast.lane.b32.xlu0 %v976_v5, 256 }
  0x61   :  { %1918 = vmatpush3.bf16.msra.mxu1 %v1996_v59 }
  0x62   :  { %563 = vmatmul.mubr.bf16.gmra.mxu0 %v2236_v39  ;;  %v306_v39 = vsel %vm282_vm1, %v304_v34, %v305_v35  ;;  %1919 = vmatprep.subr.bf16.mxu1 %v1997_v60 }
  0x63   :  { %570 = vmatprep.mubr.bf16.mxu0 %v225_v26  ;;  %989 = vbcast.lane.b32.xlu1 %v987_v7, 256 }
  0x64   :  { %1904 = vmatmul.mubr.bf16.gmra.mxu1 %v300_v29  ;;  %1000 = vbcast.lane.b32.xlu0 %v998_v8, 256 }
  0x65   :  { %1907 = vmatprep.mubr.bf16.mxu1 %v303_v30  ;;  %1920 = vmatpush3.bf16.msra.mxu1 %v1997_v60 }
  0x66   :  { %1921 = vmatprep.subr.bf16.mxu1 %v1998_v61 }
  0x67   :  { %993 = vbcast.lane.b32.xlu1 %v987_v7, 264 }
  0x69   :  { %1922 = vmatpush3.bf16.msra.mxu1 %v1998_v61 }
  0x6a   :  { %571 = vmatmul.mubr.bf16.gmra.mxu0 %v2242_v51  ;;  %v261_v51 = vsel %vm177_vm0, %v256_v48, %v260_v49 }
  0x6b   :  { %578 = vmatprep.mubr.bf16.mxu0 %v237_v36  ;;  %1004 = vbcast.lane.b32.xlu1 %v998_v8, 264 }
  0x6c   :  { %1908 = vmatmul.mubr.bf16.gmra.mxu1 %v306_v39 }
  0x72   :  { %579 = vmatmul.mubr.bf16.gmra.mxu0 %v2248_v62  ;;  %v1999_v62 = vld [vmem:[#allocation8 + $0x8] sm:$0xff]  }
  0x73   :  { %586 = vmatprep.mubr.bf16.mxu0 %v249_v44  ;;  %1923 = vmatprep.subr.bf16.mxu1 %v1999_v62 }
  0x74   :  { %1924 = vmatpush3.bf16.msra.mxu1 %v1999_v62 }
  0x75   :  { %1925 = vmatprep.subr.bf16.mxu1 %v2000_v63 }
  0x78   :  { %1926 = vmatpush3.bf16.msra.mxu1 %v2000_v63 }
  0x7a   :  { %587 = vmatmul.mubr.bf16.gmra.mxu0 %v1987_v9  ;;  %v2290_v9 = vsub.s32 3, %v2270_v1 }
  0x7b   :  { %594 = vmatprep.mubr.bf16.mxu0 %v261_v51 }
  0x7c   :  { %v1009_v10 = vrot.slane %v2272_v2, %v2290_v9 }
  0x7e   :  { %1011 = vbcast.lane.b32.xlu0 %v1009_v10, 256  ;;  %1015 = vbcast.lane.b32.xlu1 %v1009_v10, 264 }
  0x82   :  { %595 = vmatmul.mubr.bf16.gmra.mxu0 %v1989_v17  ;;  %1022 = vbcast.lane.b32.xlu0 %v1020_v12, 256 }
  0x83   :  { %602 = vmatprep.mubr.bf16.mxu0 %v273_v57  ;;  %1026 = vbcast.lane.b32.xlu1 %v1020_v12, 264 }
  0x86   :  { %1033 = vbcast.lane.b32.xlu0 %v1031_v14, 256 }
  0x87   :  { %1037 = vbcast.lane.b32.xlu1 %v1031_v14, 264 }
  0x8a   :  { %603 = vmatmul.mubr.bf16.gmra.mxu0 %v1991_v27  ;;  %1044 = vbcast.lane.b32.xlu0 %v1042_v16, 256 }
  0x8b   :  { %1048 = vbcast.lane.b32.xlu1 %v1042_v16, 264 }
 0x112   :  { %v1799_v17 = vpop.f32.mrf.mxu0 }
 0x114   :  { %v1800_v18 = vpop.f32.mrf.mxu0  ;;  %v1897_v21 = vpop.f32.mrf.mxu1 }
 0x115   :  { %v1801_v20 = vadd.f32 %v1800_v18, %v1799_v17 }
 0x116   :  { %v1802_v22 = vpop.f32.mrf.mxu0  ;;  %v645_v24 = vpop.f32.mrf.mxu1 }
 0x117   :  { %v549_v23 = vadd.f32 %v1801_v20, %v2312_v19 }
 0x118   :  { %v1803_v25 = vpop.f32.mrf.mxu0  ;;  %v1898_v27 = vpop.f32.mrf.mxu1 }
 0x119   :  { %v1804_v26 = vadd.f32 %v1803_v25, %v1802_v22  ;;  %v2315_v29 = vadd.f32 %v645_v24, %v549_v23 }
 0x11a   :  { %v1805_v28 = vpop.f32.mrf.mxu0  ;;  %v648_v31 = vpop.f32.mrf.mxu1 }
 0x11b   :  { %v552_v30 = vadd.f32 %v1804_v26, %v2312_v19  ;;  %v2734_v37 = vmax.f32 %v2315_v29, 0.0 }
 0x11c   :  { %v1806_v32 = vpop.f32.mrf.mxu0  ;;  %v1901_v36 = vpop.f32.mrf.mxu1 }
 0x11d   :  { %v1807_v33 = vadd.f32 %v1806_v32, %v1805_v28  ;;  %v2318_v34 = vadd.f32 %v648_v31, %v552_v30 }
 0x11e   :  { %v1808_v35 = vpop.f32.mrf.mxu0  ;;  %v661_v44 = vpop.f32.mrf.mxu1 }
 0x11f   :  { %v557_v38 = vadd.f32 %v1807_v33, %v2312_v19  ;;  %v2739_v40 = vmax.f32 %v2318_v34, 0.0 }
 0x120   :  { %v1809_v39 = vpop.f32.mrf.mxu0  ;;  %v1902_v51 = vpop.f32.mrf.mxu1 }
 0x121   :  { %v724_v41 = vpack.c.bf16 %v2739_v40, %v2734_v37  ;;  %v1810_v42 = vadd.f32 %v1809_v39, %v1808_v35  ;;  %v2327_v45 = vadd.f32 %v1897_v21, %v557_v38 }
 0x122   :  { %v1811_v43 = vpop.f32.mrf.mxu0  ;;  %v664_v59 = vpop.f32.mrf.mxu1 }
 0x123   :  { %v560_v46 = vadd.f32 %v1810_v42, %v2312_v19  ;;  %1927 = vmatprep.mubr.bf16.mxu1 %v724_v41  ;;  %v2738_v52 = vmax.f32 %v2327_v45, 0.0 }
 0x124   :  { %v1812_v47 = vpop.f32.mrf.mxu0  ;;  %v1905_v8 = vpop.f32.mrf.mxu1 }
 0x125   :  { %v2330_v48 = vadd.f32 %v1898_v27, %v560_v46  ;;  %v1813_v49 = vadd.f32 %v1812_v47, %v1811_v43 }
 0x126   :  { %v1814_v50 = vpop.f32.mrf.mxu0  ;;  %v677_v21 = vpop.f32.mrf.mxu1 }
 0x127   :  { %v2741_v53 = vmax.f32 %v2330_v48, 0.0  ;;  %v565_v54 = vadd.f32 %v1813_v49, %v2312_v19 }
 0x128   :  { %v1815_v55 = vpop.f32.mrf.mxu0  ;;  %v1906_v28 = vpop.f32.mrf.mxu1 }
 0x129   :  { %v725_v56 = vpack.c.bf16 %v2741_v53, %v2738_v52  ;;  %v1816_v57 = vadd.f32 %v1815_v55, %v1814_v50  ;;  %v2339_v60 = vadd.f32 %v661_v44, %v565_v54 }
 0x12a   :  { %v1817_v58 = vpop.f32.mrf.mxu0  ;;  %v680_v39 = vpop.f32.mrf.mxu1 }
 0x12b   :  { %1928 = vmatmul.mubr.bf16.vlgmr.msra.gmra.mxu1 %v725_v56  ;;  %v568_v61 = vadd.f32 %v1816_v57, %v2312_v19  ;;  %v2736_v10 = vmax.f32 %v2339_v60, 0.0 }
 0x12c   :  { %v1818_v62 = vpop.f32.mrf.mxu0  ;;  %v1909_v49 = vpop.f32.mrf.mxu1 }
 0x12d   :  { %v1819_v63 = vadd.f32 %v1818_v62, %v1817_v58  ;;  %v2342_v5 = vadd.f32 %v664_v59, %v568_v61 }
 0x12e   :  { %v1820_v7 = vpop.f32.mrf.mxu0  ;;  %v693_v59 = vpop.f32.mrf.mxu1 }
 0x12f   :  { %v573_v12 = vadd.f32 %v1819_v63, %v2312_v19  ;;  %v2740_v14 = vmax.f32 %v2342_v5, 0.0 }
 0x130   :  { %v1821_v16 = vpop.f32.mrf.mxu0 }
 0x131   :  { %v726_v17 = vpack.c.bf16 %v2740_v14, %v2736_v10  ;;  %v1822_v18 = vadd.f32 %v1821_v16, %v1820_v7  ;;  %v2351_v22 = vadd.f32 %v1901_v36, %v573_v12 }
 0x132   :  { %v1823_v20 = vpop.f32.mrf.mxu0 }
 0x133   :  { %v576_v23 = vadd.f32 %v1822_v18, %v2312_v19  ;;  %1931 = vmatprep.mubr.bf16.mxu1 %v726_v17  ;;  %v2733_v30 = vmax.f32 %v2351_v22, 0.0  ;;  %v1910_v17 = vpop.f32.mrf.mxu1 }
 0x134   :  { %v1824_v24 = vpop.f32.mrf.mxu0 }
 0x135   :  { %v2354_v25 = vadd.f32 %v1902_v51, %v576_v23  ;;  %v1825_v26 = vadd.f32 %v1824_v24, %v1823_v20 }
 0x136   :  { %v1826_v27 = vpop.f32.mrf.mxu0 }
 0x137   :  { %v2737_v31 = vmax.f32 %v2354_v25, 0.0  ;;  %v581_v32 = vadd.f32 %v1825_v26, %v2312_v19 }
 0x138   :  { %v1827_v33 = vpop.f32.mrf.mxu0 }
 0x139   :  { %v1828_v35 = vadd.f32 %v1827_v33, %v1826_v27  ;;  %v727_v36 = vpack.c.bf16 %v2737_v31, %v2733_v30  ;;  %v2363_v41 = vadd.f32 %v677_v21, %v581_v32  ;;  %v696_v27 = vpop.f32.mrf.mxu1 }
 0x13a   :  { %v1829_v38 = vpop.f32.mrf.mxu0 }
 0x13b   :  { %1932 = vmatmul.mubr.bf16.gmra.mxu1 %v727_v36  ;;  %v584_v42 = vadd.f32 %v1828_v35, %v2312_v19  ;;  %v2732_v50 = vmax.f32 %v2363_v41, 0.0 }
 0x13c   :  { %v1830_v43 = vpop.f32.mrf.mxu0 }
 0x13d   :  { %v1831_v44 = vadd.f32 %v1830_v43, %v1829_v38  ;;  %v2366_v46 = vadd.f32 %v680_v39, %v584_v42 }
 0x13e   :  { %v1832_v47 = vpop.f32.mrf.mxu0 }
 0x13f   :  { %v589_v51 = vadd.f32 %v1831_v44, %v2312_v19  ;;  %v2735_v54 = vmax.f32 %v2366_v46, 0.0 }
 0x140   :  { %v1833_v55 = vpop.f32.mrf.mxu0 }
 0x141   :  { %v728_v56 = vpack.c.bf16 %v2735_v54, %v2732_v50  ;;  %v1834_v57 = vadd.f32 %v1833_v55, %v1832_v47  ;;  %v2375_v61 = vadd.f32 %v1905_v8, %v589_v51 }
 0x142   :  { %v1835_v58 = vpop.f32.mrf.mxu0 }
 0x143   :  { %v592_v62 = vadd.f32 %v1834_v57, %v2312_v19  ;;  %1935 = vmatprep.mubr.bf16.mxu1 %v728_v56  ;;  %v2731_v18 = vmax.f32 %v2375_v61, 0.0 }
 0x144   :  { %v1836_v63 = vpop.f32.mrf.mxu0 }
 0x145   :  { %v2378_v7 = vadd.f32 %v1906_v28, %v592_v62  ;;  %v1837_v12 = vadd.f32 %v1836_v63, %v1835_v58 }
 0x146   :  { %v1838_v16 = vpop.f32.mrf.mxu0 }
 0x147   :  { %v2730_v20 = vmax.f32 %v2378_v7, 0.0  ;;  %v597_v21 = vadd.f32 %v1837_v12, %v2312_v19 }
 0x148   :  { %v1839_v23 = vpop.f32.mrf.mxu0 }
 0x149   :  { %v1840_v24 = vadd.f32 %v1839_v23, %v1838_v16  ;;  %v729_v8 = vpack.c.bf16 %v2730_v20, %v2731_v18  ;;  %v2387_v28 = vadd.f32 %v693_v59, %v597_v21 }
 0x14a   :  { %v1841_v26 = vpop.f32.mrf.mxu0 }
 0x14b   :  { %1936 = vmatmul.mubr.bf16.gmra.mxu1 %v729_v8  ;;  %v600_v32 = vadd.f32 %v1840_v24, %v2312_v19  ;;  %v2729_v39 = vmax.f32 %v2387_v28, 0.0  ;;  %v2422_v8 = vld [vmem:[%s2724_s6] ss:$0 sm:$0xff] }
 0x14c   :  { %v1842_v33 = vpop.f32.mrf.mxu0 }
 0x14d   :  { %v1843_v35 = vadd.f32 %v1842_v33, %v1841_v26  ;;  %v2390_v36 = vadd.f32 %v696_v27, %v600_v32 }
 0x14e   :  { %v1844_v38 = vpop.f32.mrf.mxu0 }
 0x14f   :  { %v605_v42 = vadd.f32 %v1843_v35, %v2312_v19  ;;  %v2728_v43 = vmax.f32 %v2390_v36, 0.0 }
 0x150   :  { %v1845_v44 = vpop.f32.mrf.mxu0 }
 0x151   :  { %v730_v47 = vpack.c.bf16 %v2728_v43, %v2729_v39  ;;  %v1846_v51 = vadd.f32 %v1845_v44, %v1844_v38  ;;  %v2399_v55 = vadd.f32 %v1909_v49, %v605_v42  ;;  %v2413_v49 = vld [vmem:[%s2723_s5] ss:$0 sm:$0xff]  ;;  %s2182_s5 = smov [#allocation10]  }
 0x152   :  { %s1721_s6 = sshll.u32 %s2182_s5, 4  ;;  %s1722_s6 = int_to_ptr.vmem [resolvable:$true] %s1721_s6 }
 0x153   :  { %2744 = vst [vmem:[#allocation15_spill] sm:$0xff] %v2399_v55  ;;  %v608_v56 = vadd.f32 %v1846_v51, %v2312_v19  ;;  %1939 = vmatprep.mubr.bf16.mxu1 %v730_v47  ;;  %v2726_v58 = vmax.f32 %v2399_v55, 0.0  ;;  %s2147_s24 = scalar_lea.vmem %s1722_s6, 128  ;;  %p2152_p7 = scmp.lt.s32.totalorder %s1722_s6, %s1722_s6 }
 0x154   :  { %p2148_p6 = scmp.ne.s32.totalorder %s1722_s6, %s2147_s24  ;;  %p2153_p8 = scmp.lt.s32.totalorder %s2147_s24, %s2147_s24 }
 0x155   :  { %v2402_v57 = vadd.f32 %v1910_v17, %v608_v56 }
 0x156   :  { %p2154_p9 = por %p2153_p8, %p2152_p7 }
 0x157   :  { %2745 = vst [vmem:[#allocation16_spill] sm:$0xff] %v2402_v57  ;;  %v2727_v59 = vmax.f32 %v2402_v57, 0.0 }
 0x158   :  { %p2155_p10 = pnand %p2154_p9, %p2148_p6 }
 0x159   :  { %v731_v62 = vpack.c.bf16 %v2727_v59, %v2726_v58 }
 0x15b   :  { %1940 = vmatmul.mubr.bf16.gmra.mxu1 %v731_v62 }
 0x1eb   :  { %v1929_v63 = vpop.f32.mrf.mxu1 }
 0x1ec   :  { %v846_v19 = vadd.f32 %v1929_v63, %v2413_v49 }
 0x1ed   :  { %v837_v12 = vpop.f32.mrf.mxu1 }
 0x1ee   :  { %2001 = vtanh.f32 %v846_v19  ;;  %v838_v16 = vadd.f32 %v2413_v49, %v837_v12 }
 0x1ef   :  { %v1930_v17 = vpop.f32.mrf.mxu1 }
 0x1f0   :  { %2003 = vtanh.f32 %v838_v16  ;;  %v849_v21 = vadd.f32 %v1930_v17, %v2413_v49  ;;  %v2181_v17 = vmov 0  }
 0x1f1   :  { %v840_v23 = vpop.f32.mrf.mxu1  ;;  %1951 = vset.pattern.permute.xlu1 %v2181_v17  ;;  %1952 = vset.pattern.permute.xlu0 %v2181_v17 }
 0x1f2   :  { %2005 = vtanh.f32 %v849_v21  ;;  %v841_v24 = vadd.f32 %v2413_v49, %v840_v23 }
 0x1f4   :  { %2007 = vtanh.f32 %v841_v24 }
 0x1fb   :  { %v2002_v26 = vpop.eup %2001  ;;  %v1933_v27 = vpop.f32.mrf.mxu1 }
 0x1fc   :  { %v862_v32 = vadd.f32 %v1933_v27, %v2413_v49  ;;  %v925_v33 = vmul.f32 %v2002_v26, %v2422_v8 }
 0x1fd   :  { %v2004_v35 = vpop.eup %2003  ;;  %v853_v38 = vpop.f32.mrf.mxu1 }
 0x1fe   :  { %2009 = vtanh.f32 %v862_v32  ;;  %v854_v42 = vadd.f32 %v2413_v49, %v853_v38  ;;  %943 = vadd.xlane.f32.xlu1 %v925_v33  ;;  %v923_v44 = vmul.f32 %v2004_v35, %v2422_v8 }
 0x1ff   :  { %v2006_v47 = vpop.eup %2005  ;;  %v1934_v51 = vpop.f32.mrf.mxu1 }
 0x200   :  { %2011 = vtanh.f32 %v854_v42  ;;  %v865_v56 = vadd.f32 %v1934_v51, %v2413_v49  ;;  %939 = vadd.xlane.f32.xlu0 %v923_v44  ;;  %v926_v62 = vmul.f32 %v2006_v47, %v2422_v8 }
 0x201   :  { %v2008_v63 = vpop.eup %2007  ;;  %v856_v19 = vpop.f32.mrf.mxu1 }
 0x202   :  { %2013 = vtanh.f32 %v865_v56  ;;  %v857_v12 = vadd.f32 %v2413_v49, %v856_v19  ;;  %945 = vadd.xlane.f32.xlu1 %v926_v62  ;;  %v924_v16 = vmul.f32 %v2008_v63, %v2422_v8 }
 0x204   :  { %2015 = vtanh.f32 %v857_v12  ;;  %941 = vadd.xlane.f32.xlu0 %v924_v16 }
 0x20b   :  { %v2010_v21 = vpop.eup %2009  ;;  %v1937_v23 = vpop.f32.mrf.mxu1 }
 0x20c   :  { %v878_v24 = vadd.f32 %v1937_v23, %v2413_v49  ;;  %v929_v26 = vmul.f32 %v2010_v21, %v2422_v8 }
 0x20d   :  { %v2012_v27 = vpop.eup %2011  ;;  %v869_v32 = vpop.f32.mrf.mxu1 }
 0x20e   :  { %2017 = vtanh.f32 %v878_v24  ;;  %v870_v33 = vadd.f32 %v2413_v49, %v869_v32  ;;  %951 = vadd.xlane.f32.xlu0 %v929_v26  ;;  %v927_v47 = vmul.f32 %v2012_v27, %v2422_v8 }
 0x20f   :  { %v2014_v35 = vpop.eup %2013  ;;  %v1938_v38 = vpop.f32.mrf.mxu1 }
 0x210   :  { %2019 = vtanh.f32 %v870_v33  ;;  %v881_v42 = vadd.f32 %v1938_v38, %v2413_v49  ;;  %v930_v44 = vmul.f32 %v2014_v35, %v2422_v8 }
 0x211   :  { %v2016_v51 = vpop.eup %2015  ;;  %v872_v56 = vpop.f32.mrf.mxu1 }
 0x212   :  { %2021 = vtanh.f32 %v881_v42  ;;  %v873_v62 = vadd.f32 %v2413_v49, %v872_v56  ;;  %953 = vadd.xlane.f32.xlu1 %v930_v44  ;;  %947 = vadd.xlane.f32.xlu0 %v927_v47  ;;  %v928_v63 = vmul.f32 %v2016_v51, %v2422_v8 }
 0x214   :  { %2023 = vtanh.f32 %v873_v62 }
 0x216   :  { %949 = vadd.xlane.f32.xlu1 %v928_v63 }
 0x21b   :  { %v2018_v19 = vpop.eup %2017  ;;  %v1941_v12 = vpop.f32.mrf.mxu1 }
 0x21c   :  { %v894_v16 = vadd.f32 %v1941_v12, %v2413_v49  ;;  %v933_v17 = vmul.f32 %v2018_v19, %v2422_v8 }
 0x21d   :  { %v2020_v21 = vpop.eup %2019  ;;  %v885_v23 = vpop.f32.mrf.mxu1 }
 0x21e   :  { %2025 = vtanh.f32 %v894_v16  ;;  %v886_v24 = vadd.f32 %v2413_v49, %v885_v23  ;;  %959 = vadd.xlane.f32.xlu0 %v933_v17  ;;  %v931_v35 = vmul.f32 %v2020_v21, %v2422_v8  ;;  %v2453_v17 = vsub.s32 7, %v2270_v1  ;;  %v983_v23 = vpop.permute.xlu1 %982 }
 0x21f   :  { %v2022_v26 = vpop.eup %2021  ;;  %v1942_v27 = vpop.f32.mrf.mxu1 }
 0x220   :  { %2027 = vtanh.f32 %v886_v24  ;;  %v897_v32 = vadd.f32 %v1942_v27, %v2413_v49  ;;  %v934_v33 = vmul.f32 %v2022_v26, %v2422_v8  ;;  %v1053_v21 = vrot.slane %v2272_v2, %v2453_v17  ;;  %v979_v27 = vpop.permute.xlu0 %978 }
 0x221   :  { %v2024_v38 = vpop.eup %2023  ;;  %v888_v42 = vpop.f32.mrf.mxu1 }
 0x222   :  { %2029 = vtanh.f32 %v897_v32  ;;  %v889_v44 = vadd.f32 %v2413_v49, %v888_v42  ;;  %961 = vadd.xlane.f32.xlu1 %v934_v33  ;;  %955 = vadd.xlane.f32.xlu0 %v931_v35  ;;  %v932_v47 = vmul.f32 %v2024_v38, %v2422_v8  ;;  %v990_v24 = vpop.permute.xlu1 %989 }
 0x224   :  { %2031 = vtanh.f32 %v889_v44  ;;  %v1001_v33 = vpop.permute.xlu0 %1000 }
 0x226   :  { %957 = vadd.xlane.f32.xlu1 %v932_v47  ;;  %v994_v26 = vpop.permute.xlu1 %993 }
 0x228   :  { %v1012_v38 = vpop.permute.xlu0 %1011 }
 0x22a   :  { %v1005_v32 = vpop.permute.xlu1 %1004 }
 0x22b   :  { %v2026_v51 = vpop.eup %2025 }
 0x22c   :  { %v937_v56 = vmul.f32 %v2026_v51, %v2422_v8  ;;  %v1023_v44 = vpop.permute.xlu0 %1022 }
 0x22d   :  { %v2028_v62 = vpop.eup %2027 }
 0x22e   :  { %967 = vadd.xlane.f32.xlu0 %v937_v56  ;;  %v935_v12 = vmul.f32 %v2028_v62, %v2422_v8  ;;  %v1016_v35 = vpop.permute.xlu1 %1015 }
 0x22f   :  { %v2030_v63 = vpop.eup %2029 }
 0x230   :  { %v938_v19 = vmul.f32 %v2030_v63, %v2422_v8  ;;  %v1034_v47 = vpop.permute.xlu0 %1033 }
 0x231   :  { %v2032_v16 = vpop.eup %2031 }
 0x232   :  { %969 = vadd.xlane.f32.xlu1 %v938_v19  ;;  %963 = vadd.xlane.f32.xlu0 %v935_v12  ;;  %v936_v49 = vmul.f32 %v2032_v16, %v2422_v8  ;;  %v1027_v42 = vpop.permute.xlu1 %1026 }
 0x234   :  { %v1045_v56 = vpop.permute.xlu0 %1044 }
 0x236   :  { %965 = vadd.xlane.f32.xlu1 %v936_v49  ;;  %v1038_v8 = vpop.permute.xlu1 %1037 }
 0x23a   :  { %v1049_v51 = vpop.permute.xlu1 %1048 }
 0x247   :  { %1059 = vbcast.lane.b32.xlu1 %v1053_v21, 264 }
 0x248   :  { %1055 = vbcast.lane.b32.xlu0 %v1053_v21, 256 }
 0x287   :  { %v944_v62 = vpop.xlane.xlu1 %943 }
 0x288   :  { %v2457_v63 = vadd.f32 %v990_v24, %v944_v62 }
 0x289   :  { %v940_v2 = vpop.xlane.xlu0 %939 }
 0x28a   :  { %v2459_v19 = vadd.f32 %v979_v27, %v940_v2  ;;  %1116 = vperm.xlu1 %1951, %v2457_v63  }
 0x28b   :  { %v946_v12 = vpop.xlane.xlu1 %945 }
 0x28c   :  { %1110 = vperm.xlu0 %1952, %v2459_v19   ;;  %v2463_v49 = vadd.f32 %v994_v26, %v946_v12 }
 0x28d   :  { %v942_v16 = vpop.xlane.xlu0 %941 }
 0x28e   :  { %v2465_v21 = vadd.f32 %v983_v23, %v942_v16 }
 0x290   :  { %1119 = vperm.xlu0 %1952, %v2463_v49   ;;  %1113 = vperm.xlu1 %1951, %v2465_v21  }
 0x297   :  { %v952_v58 = vpop.xlane.xlu0 %951 }
 0x298   :  { %v2469_v24 = vadd.f32 %v1012_v38, %v952_v58 }
 0x29a   :  { %1128 = vperm.xlu1 %1951, %v2469_v24  }
 0x29b   :  { %v954_v27 = vpop.xlane.xlu1 %953  ;;  %v948_v62 = vpop.xlane.xlu0 %947 }
 0x29c   :  { %v2472_v2 = vadd.f32 %v1016_v35, %v954_v27  ;;  %v2474_v59 = vadd.f32 %v1001_v33, %v948_v62 }
 0x29e   :  { %1131 = vperm.xlu0 %1952, %v2472_v2   ;;  %1122 = vperm.xlu1 %1951, %v2474_v59  }
 0x29f   :  { %v950_v23 = vpop.xlane.xlu1 %949 }
 0x2a0   :  { %v2478_v26 = vadd.f32 %v1005_v32, %v950_v23 }
 0x2a2   :  { %1125 = vperm.xlu0 %1952, %v2478_v26  }
 0x2a7   :  { %v960_v12 = vpop.xlane.xlu0 %959 }
 0x2a8   :  { %v2481_v58 = vadd.f32 %v1034_v47, %v960_v12 }
 0x2aa   :  { %1140 = vperm.xlu1 %1951, %v2481_v58  }
 0x2ab   :  { %v962_v38 = vpop.xlane.xlu1 %961  ;;  %v956_v16 = vpop.xlane.xlu0 %955 }
 0x2ac   :  { %v2484_v35 = vadd.f32 %v1038_v8, %v962_v38  ;;  %v2486_v33 = vadd.f32 %v1023_v44, %v956_v16 }
 0x2ae   :  { %1143 = vperm.xlu0 %1952, %v2484_v35   ;;  %1134 = vperm.xlu1 %1951, %v2486_v33  }
 0x2af   :  { %v958_v27 = vpop.xlane.xlu1 %957 }
 0x2b0   :  { %v2490_v32 = vadd.f32 %v1027_v42, %v958_v27 }
 0x2b2   :  { %1137 = vperm.xlu0 %1952, %v2490_v32  }
 0x2b7   :  { %v968_v62 = vpop.xlane.xlu0 %967 }
 0x2bb   :  { %v970_v47 = vpop.xlane.xlu1 %969  ;;  %v964_v23 = vpop.xlane.xlu0 %963 }
 0x2bc   :  { %v2493_v12 = vadd.f32 %v1045_v56, %v964_v23 }
 0x2be   :  { %1146 = vperm.xlu1 %1951, %v2493_v12  }
 0x2bf   :  { %v966_v8 = vpop.xlane.xlu1 %965  ;;  %v1056_v38 = vpop.permute.xlu0 %1055 }
 0x2c0   :  { %v2496_v44 = vadd.f32 %v1049_v51, %v966_v8  ;;  %v2498_v16 = vadd.f32 %v1056_v38, %v968_v62  ;;  %v1158_v51 = vand.u32 127, %v973_v0 }
 0x2c2   :  { %1149 = vperm.xlu0 %1952, %v2496_v44   ;;  %1152 = vperm.xlu1 %1951, %v2498_v16   ;;  %v1163_v62 = vadd.s32 4294967288, %v1158_v51 }
 0x2c3   :  { %v1060_v42 = vpop.permute.xlu1 %1059 }
 0x2c4   :  { %v2502_v27 = vadd.f32 %v1060_v42, %v970_v47  ;;  %v2507_v30 = vsub.s32 %v1163_v62, %v2270_v1  ;;  %v2510_v47 = vsub.s32 %v1158_v51, %v2270_v1 }
 0x2c6   :  { %1155 = vperm.xlu0 %1952, %v2502_v27  }
 0x305   :  { %v1117_v56 = vpop.permute.xlu1 %1116 }
 0x306   :  { %v1173_v0 = vrot.slane %v1117_v56, %v2510_v47 }
 0x307   :  { %v1111_v43 = vpop.permute.xlu0 %1110 }
 0x308   :  { %v1162_v52 = vrot.slane %v1111_v43, %v2510_v47 }
 0x30b   :  { %v1114_v23 = vpop.permute.xlu1 %1113  ;;  %v1120_v39 = vpop.permute.xlu0 %1119 }
 0x30c   :  { %v1167_v42 = vrot.slane %v1114_v23, %v2507_v30  ;;  %v1177_v54 = vrot.slane %v1120_v39, %v2507_v30 }
 0x30e   :  { %v1169_v14 = vsel %vm1168_vm2, %v1167_v42, %v1162_v52  ;;  %v1178_v1 = vsel %vm1168_vm2, %v1177_v54, %v1173_v0 }
 0x30f   :  { %v1234_v56 = vsel %vm1233_vm3, %v1178_v1, %v1169_v14 }
 0x315   :  { %v1129_v20 = vpop.permute.xlu1 %1128 }
 0x316   :  { %v1191_v53 = vrot.slane %v1129_v20, %v2510_v47 }
 0x319   :  { %v1132_v18 = vpop.permute.xlu0 %1131  ;;  %v1123_v8 = vpop.permute.xlu1 %1122 }
 0x31a   :  { %v1182_v62 = vrot.slane %v1123_v8, %v2510_v47 }
 0x31d   :  { %v1126_v38 = vpop.permute.xlu0 %1125 }
 0x31e   :  { %v1186_v10 = vrot.slane %v1126_v38, %v2507_v30  ;;  %v1195_v38 = vrot.slane %v1132_v18, %v2507_v30 }
 0x320   :  { %v1187_v23 = vsel %vm1168_vm2, %v1186_v10, %v1182_v62  ;;  %v1196_v10 = vsel %vm1168_vm2, %v1195_v38, %v1191_v53 }
 0x321   :  { %v1236_v8 = vsel %vm1235_vm4, %v1187_v23, %v1234_v56 }
 0x322   :  { %v1238_v18 = vsel %vm1237_vm5, %v1196_v10, %v1236_v8 }
 0x325   :  { %v1141_v50 = vpop.permute.xlu1 %1140 }
 0x326   :  { %v1209_v20 = vrot.slane %v1141_v50, %v2510_v47 }
 0x329   :  { %v1144_v37 = vpop.permute.xlu0 %1143  ;;  %v1135_v31 = vpop.permute.xlu1 %1134 }
 0x32a   :  { %v1200_v43 = vrot.slane %v1135_v31, %v2510_v47 }
 0x32d   :  { %v1138_v40 = vpop.permute.xlu0 %1137 }
 0x32e   :  { %v1204_v39 = vrot.slane %v1138_v40, %v2507_v30  ;;  %v1213_v40 = vrot.slane %v1144_v37, %v2507_v30 }
 0x330   :  { %v1205_v52 = vsel %vm1168_vm2, %v1204_v39, %v1200_v43  ;;  %v1214_v53 = vsel %vm1168_vm2, %v1213_v40, %v1209_v20 }
 0x331   :  { %v1240_v0 = vsel %vm1239_vm6, %v1205_v52, %v1238_v18 }
 0x332   :  { %v1242_v39 = vsel %vm1241_vm7, %v1214_v53, %v1240_v0 }
 0x339   :  { %v1147_v51 = vpop.permute.xlu1 %1146 }
 0x33a   :  { %v1218_v14 = vrot.slane %v1147_v51, %v2510_v47 }
 0x33d   :  { %v1150_v54 = vpop.permute.xlu0 %1149  ;;  %v1153_v31 = vpop.permute.xlu1 %1152 }
 0x33e   :  { %v1222_v42 = vrot.slane %v1150_v54, %v2507_v30  ;;  %v1227_v37 = vrot.slane %v1153_v31, %v2510_v47 }
 0x340   :  { %v1223_v62 = vsel %vm1168_vm2, %v1222_v42, %v1218_v14 }
 0x341   :  { %v1156_v1 = vpop.permute.xlu0 %1155  ;;  %v1244_v50 = vsel %vm1243_vm8, %v1223_v62, %v1242_v39 }
 0x342   :  { %v1231_v23 = vrot.slane %v1156_v1, %v2507_v30 }
 0x344   :  { %v1232_v51 = vsel %vm1168_vm2, %v1231_v23, %v1227_v37 }
 0x345   :  { %v1246_v38 = vsel %vm1245_vm9, %v1232_v51, %v1244_v50 }
 0x346   :  { %v1249_v56 = vsel %vm1248_vm10, %v1246_v38, -inf }
 0x347   :  { %1250 = vmax.xlane.f32.xlu1 %v1249_v56 }
 0x3d0   :  { %v1251_v43 = vpop.xlane.xlu1 %1250 }
 0x3d1   :  { %v1256_v8 = vrot.slane %v1251_v43, %v2275_v3  ;;  %v1260_v54 = vrot.slane %v1251_v43, %v2278_v4  ;;  %v1272_v40 = vrot.slane %v1251_v43, %v2295_v11  ;;  %v2552_v20 = vrot.slane %v1251_v43, %v2453_v17 }
 0x3d2   :  { %v1264_v0 = vrot.slane %v1251_v43, %v2283_v6 }
 0x3d3   :  { %v1293_v52 = vsub.f32 %v2459_v19, %v1256_v8  ;;  %v1294_v10 = vsub.f32 %v2465_v21, %v1256_v8  ;;  %v1295_v18 = vsub.f32 %v2457_v63, %v1260_v54  ;;  %v1302_v31 = vsub.f32 %v2490_v32, %v1272_v40 }
 0x3d4   :  { %v1296_v19 = vsub.f32 %v2463_v49, %v1260_v54  ;;  %v1308_v21 = vsub.f32 %v2502_v27, %v2552_v20  ;;  %v1297_v53 = vsub.f32 %v2474_v59, %v1264_v0  ;;  %v1268_v32 = vrot.slane %v1251_v43, %v2290_v9 }
 0x3d5   :  { %v1309_v42 = vmul.f32 1.442695, %v1293_v52  ;;  %v1311_v14 = vmul.f32 1.442695, %v1294_v10  ;;  %v1313_v62 = vmul.f32 1.442695, %v1295_v18  ;;  %v1298_v23 = vsub.f32 %v2478_v26, %v1264_v0 }
 0x3d6   :  { %v1327_v1 = vmul.f32 1.442695, %v1302_v31  ;;  %v1315_v63 = vmul.f32 1.442695, %v1296_v19  ;;  %v1339_v37 = vmul.f32 1.442695, %v1308_v21  ;;  %v1299_v49 = vsub.f32 %v2469_v24, %v1268_v32 }
 0x3d7   :  { %2033 = vpow2.f32 %v1309_v42  ;;  %v1317_v39 = vmul.f32 1.442695, %v1297_v53  ;;  %v1319_v27 = vmul.f32 1.442695, %v1298_v23  ;;  %v1300_v50 = vsub.f32 %v2472_v2, %v1268_v32 }
 0x3d8   :  { %2035 = vpow2.f32 %v1311_v14  ;;  %v1321_v38 = vmul.f32 1.442695, %v1299_v49  ;;  %v1276_v24 = vrot.slane %v1251_v43, %v2300_v13  ;;  %v1301_v8 = vsub.f32 %v2486_v33, %v1272_v40 }
 0x3d9   :  { %2037 = vpow2.f32 %v1313_v62  ;;  %v1323_v52 = vmul.f32 1.442695, %v1300_v50  ;;  %v1280_v33 = vrot.slane %v1251_v43, %v2305_v15 }
 0x3da   :  { %2039 = vpow2.f32 %v1327_v1  ;;  %v1303_v10 = vsub.f32 %v2481_v58, %v1276_v24  ;;  %v1325_v42 = vmul.f32 1.442695, %v1301_v8  ;;  %v1304_v40 = vsub.f32 %v2484_v35, %v1276_v24 }
 0x3db   :  { %2041 = vpow2.f32 %v1315_v63  ;;  %v1305_v58 = vsub.f32 %v2493_v12, %v1280_v33  ;;  %v1306_v62 = vsub.f32 %v2496_v44, %v1280_v33  ;;  %v1307_v35 = vsub.f32 %v2498_v16, %v2552_v20 }
 0x3dc   :  { %2043 = vpow2.f32 %v1339_v37  ;;  %v1329_v14 = vmul.f32 1.442695, %v1303_v10  ;;  %v1331_v0 = vmul.f32 1.442695, %v1304_v40 }
 0x3dd   :  { %2045 = vpow2.f32 %v1317_v39  ;;  %v1333_v43 = vmul.f32 1.442695, %v1305_v58  ;;  %v1335_v21 = vmul.f32 1.442695, %v1306_v62  ;;  %v1337_v53 = vmul.f32 1.442695, %v1307_v35 }
 0x3de   :  { %2047 = vpow2.f32 %v1319_v27 }
 0x3df   :  { %2049 = vpow2.f32 %v1321_v38 }
 0x3e0   :  { %2051 = vpow2.f32 %v1323_v52 }
 0x3e1   :  { %2053 = vpow2.f32 %v1325_v42 }
 0x3e2   :  { %2055 = vpow2.f32 %v1329_v14 }
 0x3e3   :  { %2057 = vpow2.f32 %v1331_v0 }
 0x3e4   :  { %v2561_v51 = vpop.eup %2033  ;;  %2059 = vpow2.f32 %v1333_v43 }
 0x3e5   :  { %1358 = vperm.xlu0 %1952, %v2561_v51   ;;  %v2565_v59 = vpop.eup %2035  ;;  %2061 = vpow2.f32 %v1335_v21 }
 0x3e6   :  { %v2569_v26 = vpop.eup %2037  ;;  %2063 = vpow2.f32 %v1337_v53 }
 0x3e7   :  { %v2571_v56 = vpop.eup %2039 }
 0x3e8   :  { %1385 = vperm.xlu1 %1951, %v2571_v56   ;;  %v2577_v54 = vpop.eup %2041 }
 0x3e9   :  { %1361 = vperm.xlu0 %1952, %v2565_v59   ;;  %v2580_v2 = vpop.eup %2043 }
 0x3ea   :  { %v2583_v18 = vpop.eup %2045 }
 0x3eb   :  { %v2589_v31 = vpop.eup %2047 }
 0x3ec   :  { %1403 = vperm.xlu1 %1951, %v2580_v2   ;;  %v2593_v19 = vpop.eup %2049 }
 0x3ed   :  { %1364 = vperm.xlu0 %1952, %v2569_v26   ;;  %v2597_v1 = vpop.eup %2051 }
 0x3ee   :  { %v2602_v12 = vpop.eup %2053 }
 0x3ef   :  { %v2605_v63 = vpop.eup %2055 }
 0x3f0   :  { %v2608_v44 = vpop.eup %2057 }
 0x3f1   :  { %1367 = vperm.xlu0 %1952, %v2577_v54   ;;  %v2611_v37 = vpop.eup %2059 }
 0x3f2   :  { %v2614_v16 = vpop.eup %2061 }
 0x3f3   :  { %v2617_v20 = vpop.eup %2063 }
 0x3f5   :  { %1370 = vperm.xlu0 %1952, %v2583_v18  }
 0x3f9   :  { %1373 = vperm.xlu0 %1952, %v2589_v31  }
 0x3fd   :  { %1376 = vperm.xlu0 %1952, %v2593_v19  }
 0x401   :  { %1379 = vperm.xlu0 %1952, %v2597_v1  }
 0x405   :  { %1382 = vperm.xlu0 %1952, %v2602_v12  }
 0x409   :  { %1388 = vperm.xlu0 %1952, %v2605_v63  }
 0x40d   :  { %1391 = vperm.xlu0 %1952, %v2608_v44  }
 0x411   :  { %1394 = vperm.xlu0 %1952, %v2611_v37  }
 0x415   :  { %1397 = vperm.xlu0 %1952, %v2614_v16  }
 0x419   :  { %1400 = vperm.xlu0 %1952, %v2617_v20  }
 0x460   :  { %v1359_v32 = vpop.permute.xlu0 %1358 }
 0x461   :  { %v1408_v21 = vrot.slane %v1359_v32, %v2510_v47 }
 0x463   :  { %v1386_v33 = vpop.permute.xlu1 %1385 }
 0x464   :  { %v1362_v23 = vpop.permute.xlu0 %1361 }
 0x465   :  { %v1412_v58 = vrot.slane %v1362_v23, %v2507_v30 }
 0x467   :  { %v1404_v32 = vpop.permute.xlu1 %1403 }
 0x468   :  { %v1365_v39 = vpop.permute.xlu0 %1364 }
 0x469   :  { %v1417_v0 = vrot.slane %v1365_v39, %v2510_v47  ;;  %v1413_v39 = vsel %vm1168_vm2, %v1412_v58, %v1408_v21 }
 0x46c   :  { %v1368_v49 = vpop.permute.xlu0 %1367 }
 0x46d   :  { %v1421_v42 = vrot.slane %v1368_v49, %v2507_v30 }
 0x46f   :  { %v1422_v53 = vsel %vm1168_vm2, %v1421_v42, %v1417_v0 }
 0x470   :  { %v1371_v27 = vpop.permute.xlu0 %1370  ;;  %v1477_v42 = vsel %vm1233_vm3, %v1422_v53, %v1413_v39 }
 0x471   :  { %v1426_v43 = vrot.slane %v1371_v27, %v2510_v47 }
 0x474   :  { %v1374_v50 = vpop.permute.xlu0 %1373 }
 0x475   :  { %v1430_v40 = vrot.slane %v1374_v50, %v2507_v30  ;;  %v1448_v50 = vrot.slane %v1386_v33, %v2507_v30 }
 0x477   :  { %v1431_v23 = vsel %vm1168_vm2, %v1430_v40, %v1426_v43 }
 0x478   :  { %v1377_v38 = vpop.permute.xlu0 %1376  ;;  %v1478_v33 = vsel %vm1235_vm4, %v1431_v23, %v1477_v42 }
 0x479   :  { %v1435_v49 = vrot.slane %v1377_v38, %v2510_v47 }
 0x47c   :  { %v1380_v24 = vpop.permute.xlu0 %1379 }
 0x47d   :  { %v1439_v62 = vrot.slane %v1380_v24, %v2507_v30 }
 0x47f   :  { %v1440_v24 = vsel %vm1168_vm2, %v1439_v62, %v1435_v49 }
 0x480   :  { %v1383_v8 = vpop.permute.xlu0 %1382  ;;  %v1479_v0 = vsel %vm1237_vm5, %v1440_v24, %v1478_v33 }
 0x481   :  { %v1444_v35 = vrot.slane %v1383_v8, %v2510_v47 }
 0x483   :  { %v1449_v38 = vsel %vm1168_vm2, %v1448_v50, %v1444_v35 }
 0x484   :  { %v1389_v52 = vpop.permute.xlu0 %1388 }
 0x485   :  { %v1453_v27 = vrot.slane %v1389_v52, %v2510_v47  ;;  %v1475_v52 = vrot.slane %v1404_v32, %v2507_v30 }
 0x488   :  { %v1392_v10 = vpop.permute.xlu0 %1391 }
 0x489   :  { %v1457_v55 = vrot.slane %v1392_v10, %v2507_v30 }
 0x48b   :  { %v1458_v40 = vsel %vm1168_vm2, %v1457_v55, %v1453_v27 }
 0x48c   :  { %v1395_v14 = vpop.permute.xlu0 %1394 }
 0x48d   :  { %v1462_v10 = vrot.slane %v1395_v14, %v2510_v47 }
 0x490   :  { %v1398_v57 = vpop.permute.xlu0 %1397 }
 0x491   :  { %v1466_v8 = vrot.slane %v1398_v57, %v2507_v30  ;;  %v1480_v57 = vsel %vm1239_vm6, %v1449_v38, %v1479_v0 }
 0x492   :  { %v1481_v21 = vsel %vm1241_vm7, %v1458_v40, %v1480_v57 }
 0x493   :  { %v1467_v58 = vsel %vm1168_vm2, %v1466_v8, %v1462_v10 }
 0x494   :  { %v1401_v62 = vpop.permute.xlu0 %1400  ;;  %v1482_v14 = vsel %vm1243_vm8, %v1467_v58, %v1481_v21 }
 0x495   :  { %v1471_v43 = vrot.slane %v1401_v62, %v2510_v47  ;;  %v2748_v62 = vmax.f32 %v2318_v34, 0.0 }
 0x497   :  { %v1476_v35 = vsel %vm1168_vm2, %v1475_v52, %v1471_v43  ;;  %v2749_v52 = vmax.f32 %v2327_v45, 0.0  ;;  %v2750_v43 = vmax.f32 %v2354_v25, 0.0 }
 0x498   :  { %v1483_v53 = vsel %vm1245_vm9, %v1476_v35, %v1482_v14  ;;  %v2751_v35 = vmax.f32 %v2339_v60, 0.0 }
 0x499   :  { %v1485_v55 = vsel %vm1248_vm10, %v1483_v53, 0.0 }
 0x49a   :  { %1486 = vadd.xlane.f32.xlu0 %v1485_v55 }
 0x523   :  { %v1487_v49 = vpop.xlane.xlu0 %1486 }
 0x524   :  { %2065 = vrcp.f32 %v1487_v49 }
 0x531   :  { %v2066_v50 = vpop.eup %2065 }
 0x532   :  { %v1509_v30 = vrot.slane %v2066_v50, %v2295_v11  ;;  %v1493_v23 = vrot.slane %v2066_v50, %v2275_v3  ;;  %v1521_v24 = vrot.slane %v2066_v50, %v2453_v17  ;;  %v1497_v32 = vrot.slane %v2066_v50, %v2278_v4 }
 0x534   :  { %v1538_v47 = vmul.f32 %v2602_v12, %v1509_v30  ;;  %v1530_v39 = vmul.f32 %v2561_v51, %v1493_v23  ;;  %v1545_v27 = vmul.f32 %v2580_v2, %v1521_v24  ;;  %v1531_v8 = vmul.f32 %v2565_v59, %v1493_v23 }
 0x535   :  { %v1532_v11 = vmul.f32 %v2569_v26, %v1497_v32  ;;  %v1533_v3 = vmul.f32 %v2577_v54, %v1497_v32  ;;  %v1501_v12 = vrot.slane %v2066_v50, %v2283_v6  ;;  %v1505_v2 = vrot.slane %v2066_v50, %v2290_v9 }
 0x536   :  { %1588 = vperm.xlu0 %1952, %v1538_v47   ;;  %1548 = vperm.xlu1 %1951, %v1530_v39   ;;  %v1539_v26 = vmul.f32 %v2571_v56, %v1509_v30  ;;  %v1513_v54 = vrot.slane %v2066_v50, %v2300_v13  ;;  %v2755_v30 = vmax.f32 %v2363_v41, 0.0 }
 0x537   :  { %v1534_v17 = vmul.f32 %v2583_v18, %v1501_v12  ;;  %v1535_v51 = vmul.f32 %v2589_v31, %v1501_v12  ;;  %v1536_v4 = vmul.f32 %v2593_v19, %v1505_v2  ;;  %v1537_v59 = vmul.f32 %v2597_v1, %v1505_v2 }
 0x538   :  { %v1540_v6 = vmul.f32 %v2605_v63, %v1513_v54  ;;  %v1541_v18 = vmul.f32 %v2608_v44, %v1513_v54  ;;  %v1517_v31 = vrot.slane %v2066_v50, %v2305_v15  ;;  %v1544_v1 = vmul.f32 %v2617_v20, %v1521_v24 }
 0x539   :  { %v2746_v15 = vmax.f32 %v2330_v48, 0.0  ;;  %v2752_v48 = vmax.f32 %v2366_v46, 0.0  ;;  %v2754_v50 = vmax.f32 %v2351_v22, 0.0 }
 0x53a   :  { %1623 = vperm.xlu0 %1952, %v1545_v27   ;;  %1553 = vperm.xlu1 %1951, %v1531_v8   ;;  %v1542_v9 = vmul.f32 %v2611_v37, %v1517_v31  ;;  %v1543_v19 = vmul.f32 %v2614_v16, %v1517_v31  ;;  %v2747_v37 = vmax.f32 %v2342_v5, 0.0  ;;  %v2753_v5 = vmax.f32 %v2315_v29, 0.0 }
 0x53b   :  { %v2756_v29 = vmax.f32 %v2375_v61, 0.0 }
 0x53e   :  { %1558 = vperm.xlu1 %1951, %v1532_v11  }
 0x542   :  { %1563 = vperm.xlu1 %1951, %v1533_v3   ;;  %v2757_v3 = vmax.f32 %v2378_v7, 0.0 }
 0x546   :  { %1568 = vperm.xlu1 %1951, %v1534_v17  }
 0x54a   :  { %1573 = vperm.xlu1 %1951, %v1535_v51  }
 0x54e   :  { %1578 = vperm.xlu1 %1951, %v1536_v4  }
 0x552   :  { %1583 = vperm.xlu1 %1951, %v1537_v59  }
 0x556   :  { %1593 = vperm.xlu1 %1951, %v1539_v26  }
 0x55a   :  { %1598 = vperm.xlu1 %1951, %v1540_v6  }
 0x55e   :  { %1603 = vperm.xlu1 %1951, %v1541_v18  }
 0x562   :  { %1608 = vperm.xlu1 %1951, %v1542_v9  }
 0x566   :  { %1613 = vperm.xlu1 %1951, %v1543_v19  }
 0x56a   :  { %1618 = vperm.xlu1 %1951, %v1544_v1  }
 0x5b1   :  { %v1549_v56 = vpop.permute.xlu1 %1548  ;;  %v1589_v16 = vpop.permute.xlu0 %1588 }
 0x5b2   :  { %v1626_v55 = vmul.f32 %v1549_v56, %v2753_v5  ;;  %v1634_v45 = vmul.f32 %v1589_v16, %v2755_v30  ;;  %v2758_v56 = vmax.f32 %v2387_v28, 0.0 }
 0x5b5   :  { %v1554_v13 = vpop.permute.xlu1 %1553  ;;  %v1624_v19 = vpop.permute.xlu0 %1623 }
 0x5b6   :  { %v1627_v20 = vmul.f32 %v1554_v13, %v2748_v62  ;;  %v2759_v13 = vmax.f32 %v2390_v36, 0.0 }
 0x5b8   :  { %v1642_v25 = vadd.f32 %v1627_v20, %v1626_v55  ;;  %v2762_v20 = vld [vmem:[#allocation15_spill] sm:$0xff] }
 0x5b9   :  { %v1559_v42 = vpop.permute.xlu1 %1558 }
 0x5ba   :  { %v1628_v57 = vmul.f32 %v1559_v42, %v2749_v52  ;;  %v1643_v46 = vrot.slane %v1642_v25, 4  ;;  %v2763_v52 = vmax.f32 %v2762_v20, 0.0 }
 0x5bc   :  { %v1644_v4 = vadd.f32 %v1643_v46, %v1642_v25 }
 0x5bd   :  { %v1564_v38 = vpop.permute.xlu1 %1563 }
 0x5be   :  { %v1629_v40 = vmul.f32 %v1564_v38, %v2746_v15  ;;  %v1645_v1 = vrot.slane %v1644_v4, 2 }
 0x5c0   :  { %v1649_v49 = vadd.f32 %v1629_v40, %v1628_v57 }
 0x5c1   :  { %v1569_v63 = vpop.permute.xlu1 %1568 }
 0x5c2   :  { %v1630_v14 = vmul.f32 %v1569_v63, %v2751_v35  ;;  %v1650_v60 = vrot.slane %v1649_v49, 4 }
 0x5c4   :  { %v1651_v17 = vadd.f32 %v1650_v60, %v1649_v49 }
 0x5c5   :  { %v1574_v10 = vpop.permute.xlu1 %1573 }
 0x5c6   :  { %v1631_v0 = vmul.f32 %v1574_v10, %v2747_v37  ;;  %v1652_v6 = vrot.slane %v1651_v17, 2 }
 0x5c8   :  { %v1656_v23 = vadd.f32 %v1631_v0, %v1630_v14  ;;  %v1653_v63 = vadd.f32 %v1652_v6, %v1651_v17 }
 0x5c9   :  { %v1579_v33 = vpop.permute.xlu1 %1578 }
 0x5ca   :  { %v1632_v34 = vmul.f32 %v1579_v33, %v2754_v50  ;;  %v1657_v27 = vrot.slane %v1656_v23, 4 }
 0x5cc   :  { %v1658_v51 = vadd.f32 %v1657_v27, %v1656_v23 }
 0x5cd   :  { %v1584_v44 = vpop.permute.xlu1 %1583 }
 0x5ce   :  { %v1633_v21 = vmul.f32 %v1584_v44, %v2750_v43  ;;  %v1659_v31 = vrot.slane %v1658_v51, 2  ;;  %v2760_v44 = vld [vmem:[#allocation16_spill] sm:$0xff]  ;;  %v1654_v43 = vrot.slane %v1653_v63, 1 }
 0x5cf   :  { %v2761_v15 = vmax.f32 %v2760_v44, 0.0 }
 0x5d0   :  { %v1663_v39 = vadd.f32 %v1633_v21, %v1632_v34  ;;  %v1660_v37 = vadd.f32 %v1659_v31, %v1658_v51  ;;  %v1655_v50 = vadd.f32 %v1654_v43, %v1653_v63 }
 0x5d1   :  { %v1594_v58 = vpop.permute.xlu1 %1593  ;;  %v1641_v40 = vmul.f32 %v1624_v19, %v2761_v15 }
 0x5d2   :  { %v1635_v53 = vmul.f32 %v1594_v58, %v2752_v48  ;;  %v1664_v32 = vrot.slane %v1663_v39, 4  ;;  %v1646_v58 = vadd.f32 %v1645_v1, %v1644_v4  ;;  %v1661_v14 = vrot.slane %v1660_v37, 1 }
 0x5d4   :  { %v1670_v24 = vadd.f32 %v1635_v53, %v1634_v45  ;;  %v1665_v59 = vadd.f32 %v1664_v32, %v1663_v39  ;;  %v1647_v48 = vrot.slane %v1646_v58, 1  ;;  %v1662_v23 = vadd.f32 %v1661_v14, %v1660_v37 }
 0x5d5   :  { %v1599_v47 = vpop.permute.xlu1 %1598 }
 0x5d6   :  { %v1636_v11 = vmul.f32 %v1599_v47, %v2756_v29  ;;  %v1671_v12 = vrot.slane %v1670_v24, 4  ;;  %v1666_v61 = vrot.slane %v1665_v59, 2  ;;  %v1648_v47 = vadd.f32 %v1647_v48, %v1646_v58 }
 0x5d8   :  { %v1672_v54 = vadd.f32 %v1671_v12, %v1670_v24  ;;  %v1667_v16 = vadd.f32 %v1666_v61, %v1665_v59  ;;  %v1706_v27 = vsel %vm1233_vm3, %v1655_v50, %v1648_v47 }
 0x5d9   :  { %v1604_v8 = vpop.permute.xlu1 %1603  ;;  %v1707_v32 = vsel %vm1235_vm4, %v1662_v23, %v1706_v27 }
 0x5da   :  { %v1637_v22 = vmul.f32 %v1604_v8, %v2757_v3  ;;  %v1673_v38 = vrot.slane %v1672_v54, 2  ;;  %v1668_v53 = vrot.slane %v1667_v16, 1 }
 0x5dc   :  { %v1677_v41 = vadd.f32 %v1637_v22, %v1636_v11  ;;  %v1674_v28 = vadd.f32 %v1673_v38, %v1672_v54  ;;  %v1669_v25 = vadd.f32 %v1668_v53, %v1667_v16 }
 0x5dd   :  { %v1609_v2 = vpop.permute.xlu1 %1608 }
 0x5de   :  { %v1678_v26 = vrot.slane %v1677_v41, 4  ;;  %v1638_v7 = vmul.f32 %v1609_v2, %v2758_v56  ;;  %v1675_v49 = vrot.slane %v1674_v28, 1  ;;  %v1708_v3 = vsel %vm1237_vm5, %v1669_v25, %v1707_v32 }
 0x5e0   :  { %v1679_v18 = vadd.f32 %v1678_v26, %v1677_v41  ;;  %v1676_v60 = vadd.f32 %v1675_v49, %v1674_v28 }
 0x5e1   :  { %v1614_v9 = vpop.permute.xlu1 %1613 }
 0x5e2   :  { %v1639_v42 = vmul.f32 %v1614_v9, %v2759_v13  ;;  %v1680_v10 = vrot.slane %v1679_v18, 2  ;;  %v1709_v22 = vsel %vm1239_vm6, %v1676_v60, %v1708_v3 }
 0x5e4   :  { %v1684_v33 = vadd.f32 %v1639_v42, %v1638_v7  ;;  %v1681_v21 = vadd.f32 %v1680_v10, %v1679_v18 }
 0x5e5   :  { %v1619_v0 = vpop.permute.xlu1 %1618 }
 0x5e6   :  { %v1685_v62 = vrot.slane %v1684_v33, 4  ;;  %v1640_v57 = vmul.f32 %v1619_v0, %v2763_v52  ;;  %v1682_v34 = vrot.slane %v1681_v21, 1 }
 0x5e8   :  { %v1686_v36 = vadd.f32 %v1685_v62, %v1684_v33  ;;  %v1691_v35 = vadd.f32 %v1641_v40, %v1640_v57  ;;  %v1683_v8 = vadd.f32 %v1682_v34, %v1681_v21 }
 0x5ea   :  { %v1687_v5 = vrot.slane %v1686_v36, 2  ;;  %v1692_v55 = vrot.slane %v1691_v35, 4  ;;  %v1710_v17 = vsel %vm1241_vm7, %v1683_v8, %v1709_v22 }
 0x5ec   :  { %v1688_v30 = vadd.f32 %v1687_v5, %v1686_v36  ;;  %v1693_v45 = vadd.f32 %v1692_v55, %v1691_v35 }
 0x5ee   :  { %v1689_v39 = vrot.slane %v1688_v30, 1  ;;  %v1694_v24 = vrot.slane %v1693_v45, 2 }
 0x5f0   :  { %v1695_v46 = vadd.f32 %v1694_v24, %v1693_v45  ;;  %v1690_v29 = vadd.f32 %v1689_v39, %v1688_v30 }
 0x5f2   :  { %v1696_v11 = vrot.slane %v1695_v46, 1  ;;  %v1711_v41 = vsel %vm1243_vm8, %v1690_v29, %v1710_v17 }
 0x5f4   :  { %v1697_v12 = vadd.f32 %v1696_v11, %v1695_v46 }
 0x5f6   :  { %v1712_v51 = vsel %vm1245_vm9, %v1697_v12, %v1711_v41 }
 0x5f7   :  { %1714 = vst [vmem:[#allocation10] sm:$0xff] %v1712_v51 }
 0x5f8   :  { %2158 = shalt.err (!%p2155_p10)
}
 0x5f9   :  { %1724 = dma.vmem_to_hbm [thread:$0]  %s1722_s6, 128, %s2725_s7, [#allocation4]  }
 0x5fa   :  { %2173 = dma.done.wait [#allocation4], 128  }
 0x5fb   :  { %2174 = vsyncadd [#allocation4], 4294967168 }
 0x5fc   :  { %1728 = vsyncpa [#allocation3], 1 }
 0x5fd   :  { %1729 = vsyncpa [#allocation6], 1 }
 0x5fe   :  { %1730 = vsyncpa [#allocation9], 1 }
 0x5ff   :  { %1731 = vsyncpa [#allocation4], 1 }

</bundles_post_ra>
